<compile_context>
chip_gen: v5e
topology: v5e:2x2
jax: 0.10.0
libtpu: 0.0.40
codegen_flags: <defaults>
</compile_context>

<pallas_src>
import jax
import jax.numpy as jnp
from jax.experimental import pallas as pl
from jax.experimental.pallas import tpu as pltpu

NEG = -1e30  # finite stand-in for PyTorch's -inf selfmask / pad-column bias (f32 only)


# ----------------------------- Pallas kernel --------------------------------

def _seg_lstm_decode_kernel(x_ref, h0c0_ref, wihx_ref, whh_ref, bk_ref,
                            gate_ref, bias_ref, wdec_ref, bdec_ref,
                            out_ref, h_scr, c_scr):
    """One LSTM timestep (grid axis = time) for all K states stacked along the
    batch axis, fused with the per-state output gate/bias, decoder matmul and
    a log-softmax over the (lane-padded) gentypes+1 words.

    Shapes (B = K * bsz * seqlen, H = hid_size, E = emb_size, V = 128 padded):
      x_ref     (1, B, E)    word-embedding rows for this timestep
      h0c0_ref  (1, 2H)      [tanh(h0); c0] initial state vector
      wihx_ref  (4, E, H)    per-gate input weights (word-emb part only)
      whh_ref   (4, H, H)    per-gate recurrent weights
      bk_ref    (4, B, H)    per-gate, per-row bias (incl. folded state-emb term)
      gate_ref  (B, H)       state_out_gates broadcast per row
      bias_ref  (B, H)       state_out_biases broadcast per row
      wdec_ref  (H, V)       decoder weight, zero-padded to 128 columns
      bdec_ref  (1, V)       decoder bias, NEG in pad columns
      out_ref   (1, B, V)    log p(word | state, prefix) for this timestep
    """
    t = pl.program_id(0)
    B, H = h_scr.shape

    @pl.when(t == 0)
    def _():
        h_scr[...] = jnp.broadcast_to(h0c0_ref[:, 0:H], (B, H))
        c_scr[...] = jnp.broadcast_to(h0c0_ref[:, H:2 * H], (B, H))

    x = x_ref[0]            # (B, E)
    h = h_scr[...]          # (B, H)
    c = c_scr[...]

    def gate(g):            # torch LSTM gate order: i, f, g, o
        return (jnp.dot(x, wihx_ref[g], preferred_element_type=jnp.float32)
                + jnp.dot(h, whh_ref[g], preferred_element_type=jnp.float32)
                + bk_ref[g])

    i = jax.nn.sigmoid(gate(0))
    f = jax.nn.sigmoid(gate(1))
    g = jnp.tanh(gate(2))
    o = jax.nn.sigmoid(gate(3))
    c_new = f * c + i * g
    h_new = o * jnp.tanh(c_new)
    h_scr[...] = h_new
    c_scr[...] = c_new

    # state_out_gates * states + state_out_biases, decoder, log-softmax
    s = gate_ref[...] * h_new + bias_ref[...]
    logits = jnp.dot(s, wdec_ref[...], preferred_element_type=jnp.float32) + bdec_ref[...]
    mx = jnp.max(logits, axis=-1, keepdims=True)
    lse = jnp.log(jnp.sum(jnp.exp(logits - mx), axis=-1, keepdims=True)) + mx
    out_ref[0] = logits - lse


def seg_lstm_decode(segembs_k, h0c0, wihx4, whh4, bk4, gate_rows, bias_rows,
                    wdec_pad, bdec_pad):
    Lp1, B, E = segembs_k.shape
    H = gate_rows.shape[-1]
    V = wdec_pad.shape[1]
    return pl.pallas_call(
        _seg_lstm_decode_kernel,
        out_shape=jax.ShapeDtypeStruct((Lp1, B, V), jnp.float32),
        grid_spec=pltpu.PrefetchScalarGridSpec(
            num_scalar_prefetch=0,
            grid=(Lp1,),
            in_specs=[
                pl.BlockSpec((1, B, E), lambda t: (t, 0, 0)),
                pl.BlockSpec((1, 2 * H), lambda t: (0, 0)),
                pl.BlockSpec((4, E, H), lambda t: (0, 0, 0)),
                pl.BlockSpec((4, H, H), lambda t: (0, 0, 0)),
                pl.BlockSpec((4, B, H), lambda t: (0, 0, 0)),
                pl.BlockSpec((B, H), lambda t: (0, 0)),
                pl.BlockSpec((B, H), lambda t: (0, 0)),
                pl.BlockSpec((H, V), lambda t: (0, 0)),
                pl.BlockSpec((1, V), lambda t: (0, 0)),
            ],
            out_specs=pl.BlockSpec((1, B, V), lambda t: (t, 0, 0)),
            scratch_shapes=[pltpu.VMEM((B, H), jnp.float32),
                            pltpu.VMEM((B, H), jnp.float32)],
        ),
        compiler_params=pltpu.CompilerParams(dimension_semantics=("arbitrary",)),
    )(segembs_k, h0c0, wihx4, whh4, bk4, gate_rows, bias_rows, wdec_pad, bdec_pad)


# ----------------------------- parameters ------------------------------------

def init_params(key, cfg):
    ir = cfg['initrange']
    H, E, K, L = cfg['hid_size'], cfg['emb_size'], cfg['K'], cfg['L']
    hsmm_emb = 2 * E
    rnninsz = E + hsmm_emb
    V, W = cfg['gentypes'], cfg['wordtypes']
    keys = jax.random.split(key, 12)
    u = lambda k, shape: jax.random.uniform(k, shape, jnp.float32, -ir, ir)
    lut = u(keys[0], (W, E)).at[cfg['pad_idx']].set(0.0)
    return dict(
        lut=lut,
        start_emb=u(keys[1], (1, 1, E)),
        pad_emb=jnp.zeros((1, 1, E), jnp.float32),           # torch: zeros, not re-init
        state_embs=u(keys[2], (K, 1, 1, hsmm_emb)),
        state_out_gates=u(keys[3], (K, 1, 1, H)),
        state_out_biases=u(keys[4], (K, 1, 1, H)),
        h0_lin=jnp.zeros((2 * H,), jnp.float32),              # torch: zeros
        wih=u(keys[5], (4 * H, rnninsz)),                     # seg_rnn weight_ih_l0
        whh=u(keys[6], (4 * H, H)),                           # seg_rnn weight_hh_l0
        b_ih=u(keys[7], (4 * H,)),
        b_hh=u(keys[8], (4 * H,)),
        dec_w=u(keys[9], (V + 1, H)),                         # decoder weight
        dec_b=jnp.zeros((V + 1,), jnp.float32),               # decoder bias zeroed
        trans_weights=u(keys[10], (hsmm_emb, hsmm_emb)),
        trans_bias=u(keys[11], (K, K)),
        init_trans=jnp.ones((1, K), jnp.float32),
        len_scores=jnp.ones((1, L), jnp.float32),             # unif_lenps=True
    )


# ----------------------------- forward ----------------------------------------

def hsmm_forward(params, inps, combotargs, cfg):
    # config: unif_lenps=True, yes_self_trans=False, Kmul=1, layers=1,
    # dropout=0, args.no_mask=True (vocab_masks=None), no constraints.
    K, L, H, E = cfg['K'], cfg['L'], cfg['hid_size'], cfg['emb_size']
    bsz, seqlen = inps.shape
    hsmm_emb = 2 * E
    gentypes = cfg['gentypes']
    eop_idx = gentypes
    VPAD = 128                                       # lane-dense decoder output width

    # -------- trans_logprobs (tiny (K,K): plain JAX, no kernel launch) --------
    state_embs2d = params['state_embs'].reshape(K, hsmm_emb)
    selfmask = jnp.diag(jnp.full((K,), NEG, jnp.float32))
    sc = (state_embs2d @ params['trans_weights'] @ state_embs2d.T
          + params['trans_bias'] + selfmask)
    tscores = jax.nn.log_softmax(sc, axis=1)                                 # (K, K)
    trans_lps = jnp.broadcast_to(tscores[None, None], (seqlen - 1, bsz, K, K))
    init_lps = jnp.broadcast_to(jax.nn.log_softmax(params['init_trans'], axis=1),
                                (bsz, K))

    # -------- len_logprobs (unif_lenps) --------
    len_sc = jnp.broadcast_to(params['len_scores'], (K, L))
    lplist = [jnp.zeros((1, K), jnp.float32)]
    for l in range(2, L + 1):
        lplist.append(jax.nn.log_softmax(len_sc[:, :l], axis=1).T)           # (l, K)

    # -------- obs_logprobs --------
    x = inps.T                                        # seqlen x bsz
    embs = jnp.take(params['lut'], x, axis=0)         # seqlen x bsz x E
    xemb = jnp.transpose(embs, (1, 0, 2))             # bsz x seqlen x E (to_seg_embs in)
    rows = [jnp.broadcast_to(params['start_emb'], (bsz, seqlen, E)), xemb]
    for i in range(1, L):
        pad = jnp.broadcast_to(params['pad_emb'], (bsz, i, E))
        rows.append(jnp.concatenate([xemb[:, i:], pad], axis=1))
    segembs = jnp.stack(rows).reshape(L + 1, bsz * seqlen, E)
    Lp1, bszsl, _ = segembs.shape
    B = K * bszsl                                     # K states folded into batch rows

    segembs_k = jnp.broadcast_to(segembs[:, None], (Lp1, K, bszsl, E)).reshape(Lp1, B, E)

    # initial LSTM state as a single (1, 2H) vector (broadcast inside kernel)
    h0c0 = jnp.concatenate([jnp.tanh(params['h0_lin'][:H]),
                            params['h0_lin'][H:]]).reshape(1, 2 * H)

    # split wih into word-emb / state-emb parts; fold state part into per-state bias
    wih_t = params['wih'].T                           # (E + 2E, 4H)
    wihx_t = wih_t[:E]                                # (E, 4H)
    wihs_t = wih_t[E:]                                # (2E, 4H)
    b = (params['b_ih'] + params['b_hh']).reshape(1, 4 * H)
    bk = b + state_embs2d @ wihs_t                    # (K, 4H)
    bk_rows = jnp.broadcast_to(bk[:, None], (K, bszsl, 4 * H)).reshape(B, 4 * H)

    # lay out weights/biases per gate (torch order i,f,g,o), own (.,H) block each
    wihx4 = jnp.transpose(wihx_t.reshape(E, 4, H), (1, 0, 2))          # (4, E, H)
    whh4 = jnp.transpose(params['whh'].T.reshape(H, 4, H), (1, 0, 2))  # (4, H, H)
    bk4 = jnp.transpose(bk_rows.reshape(B, 4, H), (1, 0, 2))           # (4, B, H)

    gate_rows = jnp.broadcast_to(params['state_out_gates'].reshape(K, 1, H),
                                 (K, bszsl, H)).reshape(B, H)
    bias_rows = jnp.broadcast_to(params['state_out_biases'].reshape(K, 1, H),
                                 (K, bszsl, H)).reshape(B, H)

    # decoder padded to 128 lanes: zero weight / NEG bias in pad columns
    wdec_t = params['dec_w'].T                                          # (H, gentypes+1)
    wdec_pad = jnp.zeros((H, VPAD), jnp.float32).at[:, :gentypes + 1].set(wdec_t)
    bdec_pad = jnp.full((1, VPAD), NEG, jnp.float32).at[:, :gentypes + 1].set(
        params['dec_b'].reshape(1, gentypes + 1))

    # one pallas_call: all K states, all L+1 timesteps -> word LOG-probs
    wlogps = seg_lstm_decode(segembs_k, h0c0, wihx4, whh4, bk4,
                             gate_rows, bias_rows, wdec_pad, bdec_pad)  # (Lp1, B, 128)
    wlogps = wlogps.reshape(Lp1, K, bszsl, VPAD)

    ct = jnp.transpose(combotargs, (1, 0, 2)).reshape(L, bszsl)         # (L, bsz*seqlen)
    idx = jnp.broadcast_to(ct[:, None, :, None], (L, K, bszsl, 1))
    # TODO(synk): the torch code sums probabilities over multiple targets per position
    # before log; here combotargs holds a single target per position, so gathering the
    # log-prob directly is exact (avoids the exp->log round trip).
    lls = jnp.take_along_axis(wlogps[:L], idx, axis=-1)[..., 0]         # (L, K, bszsl)
    seglls = jnp.cumsum(lls, axis=0)
    eop_lls = wlogps[1:L + 1, :, :, eop_idx]                            # (L, K, bszsl)
    seglls = seglls + eop_lls

    obslps = jnp.transpose(seglls, (1, 0, 2)).reshape(K, L, bsz, seqlen)
    obslps = jnp.transpose(obslps, (1, 3, 2, 0))      # L x seqlen x bsz x K (Kmul == 1)

    # -------- backward DP + log marginal --------
    # TODO(synk): infc.just_bwd / logsumexp1 are external modules; the standard HSMM
    # backward recursion is implemented here in plain JAX (K, L, seqlen are tiny).
    T = seqlen
    beta = [None] * (T + 1)
    beta_star = [None] * T
    beta[T] = jnp.zeros((bsz, K), jnp.float32)
    for t in range(T - 1, -1, -1):
        steps = min(L, T - t)
        len_terms = lplist[steps - 1]                               # (steps, K)
        betas = jnp.stack([beta[t + l + 1] for l in range(steps)])  # (steps, bsz, K)
        obs = obslps[:steps, t]                                     # (steps, bsz, K)
        terms = betas + obs + len_terms[:, None, :]
        beta_star[t] = jax.nn.logsumexp(terms, axis=0)
        if t > 0:
            bt = beta_star[t][:, None, :] + trans_lps[t - 1]        # (bsz, K, K)
            beta[t] = jax.nn.logsumexp(bt, axis=2)

    log_marg = jax.nn.logsumexp(beta_star[0] + init_lps, axis=1).sum()
    return log_marg


# ----------------------------- main --------------------------------------------

if __name__ == "__main__":
    cfg = dict(K=4, Kmul=1, L=3, emb_size=16, hid_size=32, layers=1,
               wordtypes=40, gentypes=24, pad_idx=0, initrange=0.1)
    key = jax.random.PRNGKey(0)
    kp, ki, kc = jax.random.split(key, 3)
    params = init_params(kp, cfg)

    bsz, seqlen = 2, 8
    inps = jax.random.randint(ki, (bsz, seqlen), 1, cfg['wordtypes'], dtype=jnp.int32)
    # targets index the decoder's gentypes+1 outputs (eop included); padded decoder
    # columns (>= gentypes+1) are never gathered so log-probs stay finite.
    combotargs = jax.random.randint(kc, (bsz, cfg['L'], seqlen),
                                    0, cfg['gentypes'] + 1, dtype=jnp.int32)

    out = hsmm_forward(params, inps, combotargs, cfg)
    jax.block_until_ready(out)
    assert bool(jnp.isfinite(out)), "non-finite log marginal"
    print("KERNEL_OK")
</pallas_src>

<mosaic_0001>
module attributes {stable_mosaic.version = 11 : i64} {
  func.func @_seg_lstm_decode_kernel(%arg0: i32, %arg1: memref<1x64x16xf32, #tpu.memory_space<vmem>>, %arg2: memref<1x64xf32, #tpu.memory_space<vmem>>, %arg3: memref<4x16x32xf32, #tpu.memory_space<vmem>>, %arg4: memref<4x32x32xf32, #tpu.memory_space<vmem>>, %arg5: memref<4x64x32xf32, #tpu.memory_space<vmem>>, %arg6: memref<64x32xf32, #tpu.memory_space<vmem>>, %arg7: memref<64x32xf32, #tpu.memory_space<vmem>>, %arg8: memref<32x128xf32, #tpu.memory_space<vmem>>, %arg9: memref<1x128xf32, #tpu.memory_space<vmem>>, %arg10: memref<1x64x128xf32, #tpu.memory_space<vmem>>, %arg11: memref<64x32xf32, #tpu.memory_space<vmem>>, %arg12: memref<64x32xf32, #tpu.memory_space<vmem>>) attributes {dimension_semantics = [#tpu.dimension_semantics<arbitrary>], iteration_bounds = array<i64: 4>, scalar_prefetch = 0 : i64, scratch_operands = 2 : i64, tpu.core_type = #tpu.core_type<tc>, window_params = [{transform_indices = @transform_0, window_bounds = array<i64: 1, 64, 16>}, {pipeline_mode = #tpu.pipeline_mode<synchronous>, transform_indices = @transform_1, window_bounds = array<i64: 1, 64>}, {pipeline_mode = #tpu.pipeline_mode<synchronous>, transform_indices = @transform_2, window_bounds = array<i64: 4, 16, 32>}, {pipeline_mode = #tpu.pipeline_mode<synchronous>, transform_indices = @transform_3, window_bounds = array<i64: 4, 32, 32>}, {pipeline_mode = #tpu.pipeline_mode<synchronous>, transform_indices = @transform_4, window_bounds = array<i64: 4, 64, 32>}, {pipeline_mode = #tpu.pipeline_mode<synchronous>, transform_indices = @transform_5, window_bounds = array<i64: 64, 32>}, {pipeline_mode = #tpu.pipeline_mode<synchronous>, transform_indices = @transform_6, window_bounds = array<i64: 64, 32>}, {pipeline_mode = #tpu.pipeline_mode<synchronous>, transform_indices = @transform_7, window_bounds = array<i64: 32, 128>}, {pipeline_mode = #tpu.pipeline_mode<synchronous>, transform_indices = @transform_8, window_bounds = array<i64: 1, 128>}, {transform_indices = @transform_9, window_bounds = array<i64: 1, 64, 128>}]} {
    %c0_i32 = arith.constant 0 : i32
    %0 = arith.cmpi eq, %arg0, %c0_i32 : i32
    %1 = arith.extui %0 : i1 to i32
    %c0_i32_0 = arith.constant 0 : i32
    %2 = arith.cmpi ne, %1, %c0_i32_0 : i32
    scf.if %2 {
      %c0_68 = arith.constant 0 : index
      %c0_69 = arith.constant 0 : index
      %93 = vector.load %arg2[%c0_68, %c0_69] : memref<1x64xf32, #tpu.memory_space<vmem>>, vector<1x32xf32>
      %94 = vector.shape_cast %93 : vector<1x32xf32> to vector<1x32xf32>
      %95 = vector.broadcast %94 : vector<1x32xf32> to vector<64x32xf32>
      %c0_70 = arith.constant 0 : index
      %c0_71 = arith.constant 0 : index
      %96 = vector.load %arg11[%c0_70, %c0_71] : memref<64x32xf32, #tpu.memory_space<vmem>>, vector<64x32xf32>
      tpu.vector_store %arg11[%c0_70, %c0_71], %95 {strides = array<i32>} : memref<64x32xf32, #tpu.memory_space<vmem>>, vector<64x32xf32>,
      %c0_72 = arith.constant 0 : index
      %c32 = arith.constant 32 : index
      %97 = vector.load %arg2[%c0_72, %c32] : memref<1x64xf32, #tpu.memory_space<vmem>>, vector<1x32xf32>
      %98 = vector.shape_cast %97 : vector<1x32xf32> to vector<1x32xf32>
      %99 = vector.broadcast %98 : vector<1x32xf32> to vector<64x32xf32>
      %c0_73 = arith.constant 0 : index
      %c0_74 = arith.constant 0 : index
      %100 = vector.load %arg12[%c0_73, %c0_74] : memref<64x32xf32, #tpu.memory_space<vmem>>, vector<64x32xf32>
      tpu.vector_store %arg12[%c0_73, %c0_74], %99 {strides = array<i32>} : memref<64x32xf32, #tpu.memory_space<vmem>>, vector<64x32xf32>,
    } else {
    }
    %c0 = arith.constant 0 : index
    %c0_1 = arith.constant 0 : index
    %c0_2 = arith.constant 0 : index
    %3 = vector.load %arg1[%c0, %c0_1, %c0_2] : memref<1x64x16xf32, #tpu.memory_space<vmem>>, vector<1x64x16xf32>
    %4 = vector.shape_cast %3 : vector<1x64x16xf32> to vector<64x16xf32>
    %c0_3 = arith.constant 0 : index
    %c0_4 = arith.constant 0 : index
    %5 = vector.load %arg11[%c0_3, %c0_4] : memref<64x32xf32, #tpu.memory_space<vmem>>, vector<64x32xf32>
    %c0_5 = arith.constant 0 : index
    %c0_6 = arith.constant 0 : index
    %6 = vector.load %arg12[%c0_5, %c0_6] : memref<64x32xf32, #tpu.memory_space<vmem>>, vector<64x32xf32>
    %c0_7 = arith.constant 0 : index
    %c0_8 = arith.constant 0 : index
    %c0_9 = arith.constant 0 : index
    %7 = vector.load %arg3[%c0_7, %c0_8, %c0_9] : memref<4x16x32xf32, #tpu.memory_space<vmem>>, vector<1x16x32xf32>
    %8 = vector.shape_cast %7 : vector<1x16x32xf32> to vector<16x32xf32>
    %cst = arith.constant dense<0.000000e+00> : vector<64x32xf32>
    %9 = tpu.matmul %4, %8, %cst {dimension_numbers = #tpu.dot_dimension_numbers<[1], [0], [0], [1], [0, 0, 1, 1], [], []>} : vector<64x16xf32>, vector<16x32xf32>, vector<64x32xf32> -> vector<64x32xf32>
    %c0_10 = arith.constant 0 : index
    %c0_11 = arith.constant 0 : index
    %c0_12 = arith.constant 0 : index
    %10 = vector.load %arg4[%c0_10, %c0_11, %c0_12] : memref<4x32x32xf32, #tpu.memory_space<vmem>>, vector<1x32x32xf32>
    %11 = vector.shape_cast %10 : vector<1x32x32xf32> to vector<32x32xf32>
    %cst_13 = arith.constant dense<0.000000e+00> : vector<64x32xf32>
    %12 = tpu.matmul %5, %11, %cst_13 {dimension_numbers = #tpu.dot_dimension_numbers<[1], [0], [0], [1], [0, 0, 1, 1], [], []>} : vector<64x32xf32>, vector<32x32xf32>, vector<64x32xf32> -> vector<64x32xf32>
    %13 = arith.addf %9, %12 : vector<64x32xf32>
    %c0_14 = arith.constant 0 : index
    %c0_15 = arith.constant 0 : index
    %c0_16 = arith.constant 0 : index
    %14 = vector.load %arg5[%c0_14, %c0_15, %c0_16] : memref<4x64x32xf32, #tpu.memory_space<vmem>>, vector<1x64x32xf32>
    %15 = vector.shape_cast %14 : vector<1x64x32xf32> to vector<64x32xf32>
    %16 = arith.addf %13, %15 : vector<64x32xf32>
    %17 = arith.negf %16 : vector<64x32xf32>
    %18 = math.exp %17 : vector<64x32xf32>
    %cst_17 = arith.constant 1.000000e+00 : f32
    %19 = vector.broadcast %cst_17 : f32 to vector<64x32xf32>
    %20 = arith.addf %19, %18 : vector<64x32xf32>
    %21 = arith.divf %19, %20 : vector<64x32xf32>
    %c1 = arith.constant 1 : index
    %c0_18 = arith.constant 0 : index
    %c0_19 = arith.constant 0 : index
    %22 = vector.load %arg3[%c1, %c0_18, %c0_19] : memref<4x16x32xf32, #tpu.memory_space<vmem>>, vector<1x16x32xf32>
    %23 = vector.shape_cast %22 : vector<1x16x32xf32> to vector<16x32xf32>
    %cst_20 = arith.constant dense<0.000000e+00> : vector<64x32xf32>
    %24 = tpu.matmul %4, %23, %cst_20 {dimension_numbers = #tpu.dot_dimension_numbers<[1], [0], [0], [1], [0, 0, 1, 1], [], []>} : vector<64x16xf32>, vector<16x32xf32>, vector<64x32xf32> -> vector<64x32xf32>
    %c1_21 = arith.constant 1 : index
    %c0_22 = arith.constant 0 : index
    %c0_23 = arith.constant 0 : index
    %25 = vector.load %arg4[%c1_21, %c0_22, %c0_23] : memref<4x32x32xf32, #tpu.memory_space<vmem>>, vector<1x32x32xf32>
    %26 = vector.shape_cast %25 : vector<1x32x32xf32> to vector<32x32xf32>
    %cst_24 = arith.constant dense<0.000000e+00> : vector<64x32xf32>
    %27 = tpu.matmul %5, %26, %cst_24 {dimension_numbers = #tpu.dot_dimension_numbers<[1], [0], [0], [1], [0, 0, 1, 1], [], []>} : vector<64x32xf32>, vector<32x32xf32>, vector<64x32xf32> -> vector<64x32xf32>
    %28 = arith.addf %24, %27 : vector<64x32xf32>
    %c1_25 = arith.constant 1 : index
    %c0_26 = arith.constant 0 : index
    %c0_27 = arith.constant 0 : index
    %29 = vector.load %arg5[%c1_25, %c0_26, %c0_27] : memref<4x64x32xf32, #tpu.memory_space<vmem>>, vector<1x64x32xf32>
    %30 = vector.shape_cast %29 : vector<1x64x32xf32> to vector<64x32xf32>
    %31 = arith.addf %28, %30 : vector<64x32xf32>
    %32 = arith.negf %31 : vector<64x32xf32>
    %33 = math.exp %32 : vector<64x32xf32>
    %cst_28 = arith.constant 1.000000e+00 : f32
    %34 = vector.broadcast %cst_28 : f32 to vector<64x32xf32>
    %35 = arith.addf %34, %33 : vector<64x32xf32>
    %36 = arith.divf %34, %35 : vector<64x32xf32>
    %c2 = arith.constant 2 : index
    %c0_29 = arith.constant 0 : index
    %c0_30 = arith.constant 0 : index
    %37 = vector.load %arg3[%c2, %c0_29, %c0_30] : memref<4x16x32xf32, #tpu.memory_space<vmem>>, vector<1x16x32xf32>
    %38 = vector.shape_cast %37 : vector<1x16x32xf32> to vector<16x32xf32>
    %cst_31 = arith.constant dense<0.000000e+00> : vector<64x32xf32>
    %39 = tpu.matmul %4, %38, %cst_31 {dimension_numbers = #tpu.dot_dimension_numbers<[1], [0], [0], [1], [0, 0, 1, 1], [], []>} : vector<64x16xf32>, vector<16x32xf32>, vector<64x32xf32> -> vector<64x32xf32>
    %c2_32 = arith.constant 2 : index
    %c0_33 = arith.constant 0 : index
    %c0_34 = arith.constant 0 : index
    %40 = vector.load %arg4[%c2_32, %c0_33, %c0_34] : memref<4x32x32xf32, #tpu.memory_space<vmem>>, vector<1x32x32xf32>
    %41 = vector.shape_cast %40 : vector<1x32x32xf32> to vector<32x32xf32>
    %cst_35 = arith.constant dense<0.000000e+00> : vector<64x32xf32>
    %42 = tpu.matmul %5, %41, %cst_35 {dimension_numbers = #tpu.dot_dimension_numbers<[1], [0], [0], [1], [0, 0, 1, 1], [], []>} : vector<64x32xf32>, vector<32x32xf32>, vector<64x32xf32> -> vector<64x32xf32>
    %43 = arith.addf %39, %42 : vector<64x32xf32>
    %c2_36 = arith.constant 2 : index
    %c0_37 = arith.constant 0 : index
    %c0_38 = arith.constant 0 : index
    %44 = vector.load %arg5[%c2_36, %c0_37, %c0_38] : memref<4x64x32xf32, #tpu.memory_space<vmem>>, vector<1x64x32xf32>
    %45 = vector.shape_cast %44 : vector<1x64x32xf32> to vector<64x32xf32>
    %46 = arith.addf %43, %45 : vector<64x32xf32>
    %47 = math.tanh %46 : vector<64x32xf32>
    %c3 = arith.constant 3 : index
    %c0_39 = arith.constant 0 : index
    %c0_40 = arith.constant 0 : index
    %48 = vector.load %arg3[%c3, %c0_39, %c0_40] : memref<4x16x32xf32, #tpu.memory_space<vmem>>, vector<1x16x32xf32>
    %49 = vector.shape_cast %48 : vector<1x16x32xf32> to vector<16x32xf32>
    %cst_41 = arith.constant dense<0.000000e+00> : vector<64x32xf32>
    %50 = tpu.matmul %4, %49, %cst_41 {dimension_numbers = #tpu.dot_dimension_numbers<[1], [0], [0], [1], [0, 0, 1, 1], [], []>} : vector<64x16xf32>, vector<16x32xf32>, vector<64x32xf32> -> vector<64x32xf32>
    %c3_42 = arith.constant 3 : index
    %c0_43 = arith.constant 0 : index
    %c0_44 = arith.constant 0 : index
    %51 = vector.load %arg4[%c3_42, %c0_43, %c0_44] : memref<4x32x32xf32, #tpu.memory_space<vmem>>, vector<1x32x32xf32>
    %52 = vector.shape_cast %51 : vector<1x32x32xf32> to vector<32x32xf32>
    %cst_45 = arith.constant dense<0.000000e+00> : vector<64x32xf32>
    %53 = tpu.matmul %5, %52, %cst_45 {dimension_numbers = #tpu.dot_dimension_numbers<[1], [0], [0], [1], [0, 0, 1, 1], [], []>} : vector<64x32xf32>, vector<32x32xf32>, vector<64x32xf32> -> vector<64x32xf32>
    %54 = arith.addf %50, %53 : vector<64x32xf32>
    %c3_46 = arith.constant 3 : index
    %c0_47 = arith.constant 0 : index
    %c0_48 = arith.constant 0 : index
    %55 = vector.load %arg5[%c3_46, %c0_47, %c0_48] : memref<4x64x32xf32, #tpu.memory_space<vmem>>, vector<1x64x32xf32>
    %56 = vector.shape_cast %55 : vector<1x64x32xf32> to vector<64x32xf32>
    %57 = arith.addf %54, %56 : vector<64x32xf32>
    %58 = arith.negf %57 : vector<64x32xf32>
    %59 = math.exp %58 : vector<64x32xf32>
    %cst_49 = arith.constant 1.000000e+00 : f32
    %60 = vector.broadcast %cst_49 : f32 to vector<64x32xf32>
    %61 = arith.addf %60, %59 : vector<64x32xf32>
    %62 = arith.divf %60, %61 : vector<64x32xf32>
    %63 = arith.mulf %36, %6 : vector<64x32xf32>
    %64 = arith.mulf %21, %47 : vector<64x32xf32>
    %65 = arith.addf %63, %64 : vector<64x32xf32>
    %66 = math.tanh %65 : vector<64x32xf32>
    %67 = arith.mulf %62, %66 : vector<64x32xf32>
    %c0_50 = arith.constant 0 : index
    %c0_51 = arith.constant 0 : index
    %68 = vector.load %arg11[%c0_50, %c0_51] : memref<64x32xf32, #tpu.memory_space<vmem>>, vector<64x32xf32>
    tpu.vector_store %arg11[%c0_50, %c0_51], %67 {strides = array<i32>} : memref<64x32xf32, #tpu.memory_space<vmem>>, vector<64x32xf32>,
    %c0_52 = arith.constant 0 : index
    %c0_53 = arith.constant 0 : index
    %69 = vector.load %arg12[%c0_52, %c0_53] : memref<64x32xf32, #tpu.memory_space<vmem>>, vector<64x32xf32>
    tpu.vector_store %arg12[%c0_52, %c0_53], %65 {strides = array<i32>} : memref<64x32xf32, #tpu.memory_space<vmem>>, vector<64x32xf32>,
    %c0_54 = arith.constant 0 : index
    %c0_55 = arith.constant 0 : index
    %70 = vector.load %arg6[%c0_54, %c0_55] : memref<64x32xf32, #tpu.memory_space<vmem>>, vector<64x32xf32>
    %71 = arith.mulf %70, %67 : vector<64x32xf32>
    %c0_56 = arith.constant 0 : index
    %c0_57 = arith.constant 0 : index
    %72 = vector.load %arg7[%c0_56, %c0_57] : memref<64x32xf32, #tpu.memory_space<vmem>>, vector<64x32xf32>
    %73 = arith.addf %71, %72 : vector<64x32xf32>
    %c0_58 = arith.constant 0 : index
    %c0_59 = arith.constant 0 : index
    %74 = vector.load %arg8[%c0_58, %c0_59] : memref<32x128xf32, #tpu.memory_space<vmem>>, vector<32x128xf32>
    %cst_60 = arith.constant dense<0.000000e+00> : vector<64x128xf32>
    %75 = tpu.matmul %73, %74, %cst_60 {dimension_numbers = #tpu.dot_dimension_numbers<[1], [0], [0], [1], [0, 0, 1, 1], [], []>} : vector<64x32xf32>, vector<32x128xf32>, vector<64x128xf32> -> vector<64x128xf32>
    %c0_61 = arith.constant 0 : index
    %c0_62 = arith.constant 0 : index
    %76 = vector.load %arg9[%c0_61, %c0_62] : memref<1x128xf32, #tpu.memory_space<vmem>>, vector<1x128xf32>
    %77 = vector.broadcast %76 : vector<1x128xf32> to vector<64x128xf32>
    %78 = arith.addf %75, %77 : vector<64x128xf32>
    %cst_63 = arith.constant dense<0xFF800000> : vector<64xf32>
    %79 = vector.multi_reduction <maximumf>, %78, %cst_63 [1] : vector<64x128xf32> to vector<64xf32>
    %80 = vector.shape_cast %79 : vector<64xf32> to vector<64x1xf32>
    %81 = vector.broadcast %80 : vector<64x1xf32> to vector<64x128xf32>
    %82 = arith.subf %78, %81 : vector<64x128xf32>
    %83 = math.exp %82 : vector<64x128xf32>
    %cst_64 = arith.constant dense<0.000000e+00> : vector<64xf32>
    %84 = vector.multi_reduction <add>, %83, %cst_64 [1] : vector<64x128xf32> to vector<64xf32>
    %85 = vector.shape_cast %84 : vector<64xf32> to vector<64x1xf32>
    %86 = math.log %85 : vector<64x1xf32>
    %87 = arith.addf %86, %80 : vector<64x1xf32>
    %88 = vector.broadcast %87 : vector<64x1xf32> to vector<64x128xf32>
    %89 = arith.subf %78, %88 : vector<64x128xf32>
    %c0_65 = arith.constant 0 : index
    %c0_66 = arith.constant 0 : index
    %c0_67 = arith.constant 0 : index
    %90 = vector.load %arg10[%c0_65, %c0_66, %c0_67] : memref<1x64x128xf32, #tpu.memory_space<vmem>>, vector<1x64x128xf32>
    %91 = vector.shape_cast %90 : vector<1x64x128xf32> to vector<64x128xf32>
    %92 = vector.shape_cast %89 : vector<64x128xf32> to vector<1x64x128xf32>
    tpu.vector_store %arg10[%c0_65, %c0_66, %c0_67], %92 {strides = array<i32>} : memref<1x64x128xf32, #tpu.memory_space<vmem>>, vector<1x64x128xf32>,
    return
  }
  func.func @transform_0(%arg0: i32) -> (i32, i32, i32) {
    %c0_i32 = arith.constant 0 : i32
    %c0_i32_0 = arith.constant 0 : i32
    %c0_i32_1 = arith.constant 0 : i32
    return %arg0, %c0_i32, %c0_i32_0 : i32, i32, i32
  }
  func.func @transform_1(%arg0: i32) -> (i32, i32) {
    %c0_i32 = arith.constant 0 : i32
    %c0_i32_0 = arith.constant 0 : i32
    %c0_i32_1 = arith.constant 0 : i32
    return %c0_i32, %c0_i32_0 : i32, i32
  }
  func.func @transform_2(%arg0: i32) -> (i32, i32, i32) {
    %c0_i32 = arith.constant 0 : i32
    %c0_i32_0 = arith.constant 0 : i32
    %c0_i32_1 = arith.constant 0 : i32
    %c0_i32_2 = arith.constant 0 : i32
    return %c0_i32, %c0_i32_0, %c0_i32_1 : i32, i32, i32
  }
  func.func @transform_3(%arg0: i32) -> (i32, i32, i32) {
    %c0_i32 = arith.constant 0 : i32
    %c0_i32_0 = arith.constant 0 : i32
    %c0_i32_1 = arith.constant 0 : i32
    %c0_i32_2 = arith.constant 0 : i32
    return %c0_i32, %c0_i32_0, %c0_i32_1 : i32, i32, i32
  }
  func.func @transform_4(%arg0: i32) -> (i32, i32, i32) {
    %c0_i32 = arith.constant 0 : i32
    %c0_i32_0 = arith.constant 0 : i32
    %c0_i32_1 = arith.constant 0 : i32
    %c0_i32_2 = arith.constant 0 : i32
    return %c0_i32, %c0_i32_0, %c0_i32_1 : i32, i32, i32
  }
  func.func @transform_5(%arg0: i32) -> (i32, i32) {
    %c0_i32 = arith.constant 0 : i32
    %c0_i32_0 = arith.constant 0 : i32
    %c0_i32_1 = arith.constant 0 : i32
    return %c0_i32, %c0_i32_0 : i32, i32
  }
  func.func @transform_6(%arg0: i32) -> (i32, i32) {
    %c0_i32 = arith.constant 0 : i32
    %c0_i32_0 = arith.constant 0 : i32
    %c0_i32_1 = arith.constant 0 : i32
    return %c0_i32, %c0_i32_0 : i32, i32
  }
  func.func @transform_7(%arg0: i32) -> (i32, i32) {
    %c0_i32 = arith.constant 0 : i32
    %c0_i32_0 = arith.constant 0 : i32
    %c0_i32_1 = arith.constant 0 : i32
    return %c0_i32, %c0_i32_0 : i32, i32
  }
  func.func @transform_8(%arg0: i32) -> (i32, i32) {
    %c0_i32 = arith.constant 0 : i32
    %c0_i32_0 = arith.constant 0 : i32
    %c0_i32_1 = arith.constant 0 : i32
    return %c0_i32, %c0_i32_0 : i32, i32
  }
  func.func @transform_9(%arg0: i32) -> (i32, i32, i32) {
    %c0_i32 = arith.constant 0 : i32
    %c0_i32_0 = arith.constant 0 : i32
    %c0_i32_1 = arith.constant 0 : i32
    return %arg0, %c0_i32, %c0_i32_0 : i32, i32, i32
  }
}

</mosaic_0001>

<bundles_post_ra>
// kernel: tpu_custom_call.1
= control target key start
LH: loop header
LB: loop body
LE: loop exit
PB: predicated region body
PF: predicated region fallthrough
CT: control target
= control target key end

     0   :  { %14 = vsyncpa [#allocation5], 0  ;;  %s3403_s0 = inlined_call_operand.vmem [shape: f32[4,64,16], index: 0, kind: input, shape index: {}]   ;;  %s3404_s1 = inlined_call_operand.vmem [shape: f32[1,64], index: 1, kind: input, shape index: {}]   ;;  %s3405_s2 = inlined_call_operand.vmem [shape: f32[4,16,32], index: 2, kind: input, shape index: {}]   ;;  %s3406_s3 = inlined_call_operand.vmem [shape: f32[4,32,32], index: 3, kind: input, shape index: {}]   ;;  %s3407_s4 = inlined_call_operand.vmem [shape: f32[4,64,32], index: 4, kind: input, shape index: {}]   ;;  %s3408_s5 = inlined_call_operand.vmem [shape: f32[64,32], index: 5, kind: input, shape index: {}]   ;;  %s3409_s6 = inlined_call_operand.vmem [shape: f32[64,32], index: 6, kind: input, shape index: {}]   ;;  %s3410_s7 = inlined_call_operand.vmem [shape: f32[32,128], index: 7, kind: input, shape index: {}]   ;;  %s3411_s8 = inlined_call_operand.vmem [shape: f32[1,128], index: 8, kind: input, shape index: {}]   ;;  %s3412_s9 = inlined_call_operand.hbm [shape: f32[4,64,128], index: 9, kind: output, shape index: {}]  }
   0x1   :  { %16 = vsyncpa [#allocation5 + $0x1], 0  ;;  %s2141_s30 = smov 0   ;;  %s2143_s10 = smov 0  }
   0x2   :  { %s2145_s11 = smov 0   ;;  %s2147_s12 = smov 0  }
   0x3 LB: > { %s2162_s13 = sadd.s32 4294967295, %s2086_s12   ;;  %s1660_s14 = sadd.s32 4294967294, %s2086_s12   ;;  %s2086_s12 = sphi %s2147_s12, %s3484_s12   ;;  %s2082_s11 = sphi %s2145_s11, %s3483_s11   ;;  %s2078_s10 = sphi %s2143_s10, %s3482_s10   ;;  %s2074_s30 = sphi %s2141_s30, %s3481_s30  }
   0x4   : > { %s2166_s15 = sadd.s32 1, %s2086_s12   ;;  %s223_s16 = sadd.s32 1, %s2082_s11 }
   0x5   : > { %s220_s17 = ssub.s32 %s2086_s12, %s2166_s15  ;;  %p233_p0 = scmp.ne.s32.totalorder %s2082_s11, %s2078_s10 }
   0x6   : > { %p221_p1 = scmp.eq.s32.totalorder %s220_s17, 0  ;;  %p234_p2 = scmp.eq.s32.totalorder %s2162_s13, 3 }
   0x7   : > { %p239_p3 = scmp.ne.s32.totalorder %s2078_s10, %s2074_s30  ;;  %p240_p4 = scmp.eq.s32.totalorder %s1660_s14, 3 }
   0x8   : > { %s2177_s18 = scalar_select %p221_p1, %s2082_s11, %s223_s16  }
   0x9   : > { %p2179_p5 = por %p234_p2, %p233_p0  ;;  %p2183_p6 = por %p240_p4, %p239_p3 }
   0xa   : > { %p1663_p7 = scmp.ge.s32.totalorder %s2086_s12, 1  ;;  %p290_p8 = scmp.lt.s32.totalorder %s2086_s12, 5 }
   0xc   : > { %p291_p9 = pnand %p1663_p7, %p290_p8 }
   0xd   : > { %s323_s21 = sand.u32 (!%p291_p9), 1, %s2078_s10   ;;  %p326_p10 = scmp.lt.s32.totalorder (!%p291_p9), %s2162_s13, 3 }
   0xe   : > { %294 = sbr.rel (%p291_p9) target bundleno = 851 (0x353), region = 56  ;;  %s1664_s22 = sshll.u32 (!%p291_p9), %s323_s21, 6 }
   0xf   : > { %s2199_s28 = scalar_lea.vmem (!%p291_p9), [#allocation4], %s1664_s22  ;;  %p1667_p11 = scmp.ne.s32.totalorder (!%p291_p9), %s2162_s13, 0 }
  0x13   : > { %s327_s23 = scalar_select %p326_p10, %s2162_s13, 3 }
  0x14   : > { %334 = sbr.rel (%p1667_p11) target bundleno = 149 (0x95), region = 60 }
  0x15   : > { %s1811_s24 = sshll.u32 %s327_s23, 6  ;;  %s2088_s23 = smov (!%p1667_p11), 96  }
  0x16   : > { %s2197_s27 = scalar_lea.vmem %s3403_s0, %s1811_s24 }
  0x19   : > { %v1861_v0 = vld [vmem:[%s3404_s1] ss:$0 sm:$0xff]  ;;  %vm339_vm0 = vcmask 261120  }
  0x1a   : > { %v1862_v1 = vld [vmem:[%s3404_s1] ss:$0 sm:$0xff]  ;;  %351 = vrot.lane.b32.xlu0 %v1861_v0, %s2088_s23 }
  0x1b   : > { %340 = vst.msk [vmem:[#allocation2] sm:$0xff] %vm339_vm0, %v1862_v1 }
  0x1c   : > { %341 = vst.msk [vmem:[#allocation2 + $0x8] sm:$0xff] %vm339_vm0, %v1862_v1 }
  0x1d   : > { %342 = vst.msk [vmem:[#allocation2 + $0x10] sm:$0xff] %vm339_vm0, %v1862_v1 }
  0x1e   : > { %343 = vst.msk [vmem:[#allocation2 + $0x18] sm:$0xff] %vm339_vm0, %v1862_v1 }
  0x1f   : > { %344 = vst.msk [vmem:[#allocation2 + $0x20] sm:$0xff] %vm339_vm0, %v1862_v1 }
  0x20   : > { %345 = vst.msk [vmem:[#allocation2 + $0x28] sm:$0xff] %vm339_vm0, %v1862_v1 }
  0x21   : > { %346 = vst.msk [vmem:[#allocation2 + $0x30] sm:$0xff] %vm339_vm0, %v1862_v1 }
  0x22   : > { %347 = vst.msk [vmem:[#allocation2 + $0x38] sm:$0xff] %vm339_vm0, %v1862_v1 }
  0x8c   : > { %v352_v2 = vpop.permute.xlu0 %351 }
  0x8d   : > { %354 = vst.msk [vmem:[#allocation3] sm:$0xff] %vm339_vm0, %v352_v2 }
  0x8e   : > { %355 = vst.msk [vmem:[#allocation3 + $0x8] sm:$0xff] %vm339_vm0, %v352_v2 }
  0x8f   : > { %356 = vst.msk [vmem:[#allocation3 + $0x10] sm:$0xff] %vm339_vm0, %v352_v2 }
  0x90   : > { %357 = vst.msk [vmem:[#allocation3 + $0x18] sm:$0xff] %vm339_vm0, %v352_v2 }
  0x91   : > { %358 = vst.msk [vmem:[#allocation3 + $0x20] sm:$0xff] %vm339_vm0, %v352_v2 }
  0x92   : > { %359 = vst.msk [vmem:[#allocation3 + $0x28] sm:$0xff] %vm339_vm0, %v352_v2 }
  0x93   : > { %360 = vst.msk [vmem:[#allocation3 + $0x30] sm:$0xff] %vm339_vm0, %v352_v2 }
  0x94   : > { %361 = vst.msk [vmem:[#allocation3 + $0x38] sm:$0xff] %vm339_vm0, %v352_v2 }
  0x95 PF: > { %v391_v3 = vld [vmem:[%s3406_s3 + $0x18] sm:$0xff]  ;;  %v387_v4 = vld [vmem:[%s3405_s2 + $0x8] sm:$0xff]  ;;  %v390_v5 = vld [vmem:[%s3406_s3 + $0x10] sm:$0xff]  ;;  %vm458_vm1 = vcmask 130048   ;;  %vm392_vm2 = vcmask 261120   ;;  %s1812_s17 = sshll.u32 %s2162_s13, 6 }
  0x96   : > { %429 = vmatpush.msra.mxu0 %v391_v3  ;;  %1814 = vmatpush.msra.mxu2 %v387_v4  ;;  %v386_v6 = vld [vmem:[%s3405_s2] sm:$0xff]  ;;  %v2237_v7 = vld [vmem:[%s2197_s27 + $0x18] sm:$0xff]  ;;  %v2240_v8 = vld [vmem:[%s2197_s27 + $0x28] sm:$0xff]  ;;  %s1594_s22 = scalar_lea.hbm %s3412_s9, %s1812_s17  ;;  %s1595_s24 = sshll.u32 %s2199_s28, 4  ;;  %s1596_s24 = int_to_ptr.vmem [resolvable:$true] %s1595_s24 }
  0x97   : > { %1815 = vmatpush.msra.mxu3 %v387_v4  ;;  %v1697_v9 = vld [vmem:[%s3406_s3 + $0x38] sm:$0xff]  ;;  %1813 = vmatpush.msra.mxu1 %v387_v4  ;;  %v389_v10 = vld [vmem:[%s3406_s3 + $0x8] sm:$0xff]  ;;  %v1696_v12 = vld [vmem:[%s3406_s3 + $0x30] sm:$0xff]  ;;  %s1597_s25 = sshll.u32 %s1594_s22, 4  ;;  %s1583_s13 = scalar_lea.sflag [#allocation5], %s323_s21  ;;  %s1598_s25 = int_to_ptr.hbm [resolvable:$true] %s1597_s25 }
  0x98   : > { %430 = vmatpush.msra.mxu0 %v390_v5  ;;  %1817 = vmatpush.msra.mxu2 %v386_v6  ;;  %v1693_v11 = vld [vmem:[%s3405_s2 + $0x18] sm:$0xff]  ;;  %v388_v13 = vld [vmem:[%s3406_s3] sm:$0xff]  ;;  %v1692_v14 = vld [vmem:[%s3405_s2 + $0x10] sm:$0xff]  ;;  %s2038_s26 = sshra.s32 %s1598_s25, 4  ;;  %s2044_s17 = scalar_lea.hbm %s3412_s9, 256  ;;  %s2039_s26 = int_to_ptr.hbm [resolvable:$true] %s2038_s26 }
  0x99   : > { %1818 = vmatpush.msra.mxu3 %v386_v6  ;;  %1679 = vmatmul.msk.f32.vlgmr.msra.gmra.mxu2 %vm458_vm1, %v2237_v7  ;;  %v2264_v15 = vld [vmem:[#allocation2] sm:$0xff]  ;;  %v1695_v16 = vld [vmem:[%s3406_s3 + $0x28] sm:$0xff]  ;;  %v2270_v17 = vld [vmem:[%s2197_s27 + $0x10] sm:$0xff]  ;;  %s2040_s29 = scalar_lea.hbm %s2039_s26, 64  ;;  %p2045_p1 = scmp.lt.s32.totalorder %s2039_s26, %s3412_s9 }
  0x9a   : > { %1681 = vmatmul.msk.f32.vlgmr.msra.gmra.mxu3 %vm458_vm1, %v2240_v8  ;;  %712 = vmatpush.msrb.mxu2 %v1697_v9  ;;  %v1694_v18 = vld [vmem:[%s3406_s3 + $0x20] sm:$0xff]  ;;  %v1731_v19 = vld [vmem:[%s3405_s2 + $0x28] sm:$0xff]  ;;  %v2284_v21 = vld [vmem:[%s2197_s27 + $0x30] sm:$0xff]  ;;  %p2041_p12 = scmp.ne.s32.totalorder %s2039_s26, %s2040_s29  ;;  %p2046_p2 = scmp.lt.s32.totalorder %s2044_s17, %s2040_s29 }
  0x9b   : > { %431 = vmatpush.msra.mxu0 %v389_v10  ;;  %755 = vmatpush.msrb.mxu3 %v1693_v11  ;;  %v2281_v20 = vld [vmem:[%s2197_s27 + $0x20] sm:$0xff]  ;;  %v1761_v22 = vld [vmem:[%s3405_s2 + $0x38] sm:$0xff]  ;;  %v2295_v23 = vld [vmem:[#allocation2 + $0x8] sm:$0xff] }
  0x9c   : > { %713 = vmatpush.msrb.mxu2 %v1696_v12  ;;  %1816 = vmatpush.msra.mxu1 %v386_v6  ;;  %v2300_v24 = vld [vmem:[%s2197_s27 + $0x38] sm:$0xff]  ;;  %v1760_v25 = vld [vmem:[%s3405_s2 + $0x30] sm:$0xff]  ;;  %v362_v27 = vld [vmem:[%s2197_s27] sm:$0xff]  ;;  %p2042_p13 = pnand %p2041_p12, %p2179_p5  ;;  %p2047_p3 = por %p2046_p2, %p2045_p1 }
  0x9d   : > { %432 = vmatpush.msra.mxu0 %v388_v13  ;;  %756 = vmatpush.msrb.mxu3 %v1692_v14  ;;  %v372_v26 = vld [vmem:[#allocation2 + $0x10] sm:$0xff]  ;;  %v1730_v28 = vld [vmem:[%s3405_s2 + $0x20] sm:$0xff]  ;;  %v373_v29 = vld [vmem:[#allocation2 + $0x18] sm:$0xff] }
  0x9e   : > { %1668 = vmatmul.msk.f32.vlgmr.msra.gmra.mxu0 %vm392_vm2, %v2264_v15  ;;  %714 = vmatpush.msrb.mxu2 %v1695_v16  ;;  %v363_v30 = vld [vmem:[%s2197_s27 + $0x8] sm:$0xff]  ;;  %v374_v31 = vld [vmem:[#allocation2 + $0x20] sm:$0xff]  ;;  %v1765_v32 = vld [vmem:[%s3406_s3 + $0x78] sm:$0xff]  ;;  %p2043_p0 = pneg %p2042_p13 }
  0x9f   : > { %497 = vmatpush.msrb.mxu0 %v387_v4  ;;  %1678 = vmatmul.msk.f32.vlgmr.msra.gmra.mxu1 %vm458_vm1, %v2270_v17  ;;  %v1764_v33 = vld [vmem:[%s3406_s3 + $0x70] sm:$0xff]  ;;  %v375_v34 = vld [vmem:[#allocation2 + $0x28] sm:$0xff]  ;;  %v1762_v36 = vld [vmem:[%s3406_s3 + $0x60] sm:$0xff] }
  0xa0   : > { %715 = vmatpush.msrb.mxu2 %v1694_v18  ;;  %1014 = vmatpush.msra.mxu3 %v1731_v19  ;;  %v1763_v35 = vld [vmem:[%s3406_s3 + $0x68] sm:$0xff]  ;;  %v376_v37 = vld [vmem:[#allocation2 + $0x30] sm:$0xff]  ;;  %v1735_v38 = vld [vmem:[%s3406_s3 + $0x58] sm:$0xff]  ;;  %p2048_p4 = pnand %p2047_p3, %p2043_p0 }
  0xa1   : > { %1680 = vmatmul.msk.f32.gmra.mxu2 %vm458_vm1, %v2281_v20  ;;  %498 = vmatpush.msrb.mxu0 %v386_v6  ;;  %v1734_v39 = vld [vmem:[%s3406_s3 + $0x50] sm:$0xff]  ;;  %v1733_v40 = vld [vmem:[%s3406_s3 + $0x48] sm:$0xff]  ;;  %v377_v41 = vld [vmem:[#allocation2 + $0x38] sm:$0xff] }
  0xa2   : > { %1682 = vmatmul.msk.f32.gmra.mxu3 %vm458_vm1, %v2284_v21  ;;  %1129 = vmatpush.msra.mxu2 %v1761_v22  ;;  %v1732_v42 = vld [vmem:[%s3406_s3 + $0x40] sm:$0xff]  ;;  %v526_v51 = vld [vmem:[%s3407_s4 + $0x10] sm:$0xff]  ;;  %v527_v58 = vld [vmem:[%s3407_s4 + $0x18] sm:$0xff] }
  0xa3   : > { %1015 = vmatpush.msra.mxu3 %v1730_v28  ;;  %1086 = vmatpush.msra.mxu0 %v1765_v32  ;;  %v1714_v62 = vld [vmem:[%s3407_s4 + $0x40] sm:$0xff]  ;;  %v1715_v11 = vld [vmem:[%s3407_s4 + $0x48] sm:$0xff]  ;;  %v1716_v28 = vld [vmem:[%s3407_s4 + $0x50] sm:$0xff] }
  0xa4   : > { %1130 = vmatpush.msra.mxu2 %v1760_v25  ;;  %971 = vmatpush.msrb.mxu1 %v1735_v38 }
  0xa5   : > { %1087 = vmatpush.msra.mxu0 %v1764_v33 }
  0xa6   : > { %1669 = vmatmul.msk.f32.gmra.mxu0 %vm392_vm2, %v2295_v23  ;;  %972 = vmatpush.msrb.mxu1 %v1734_v39 }
  0xa7   : > { %1088 = vmatpush.msra.mxu0 %v1763_v35 }
  0xa8   : > { %973 = vmatpush.msrb.mxu1 %v1733_v40 }
  0xa9   : > { %1698 = vmatmul.msk.f32.vlgmr.msrb.gmra.mxu2 %vm392_vm2, %v2264_v15  ;;  %1089 = vmatpush.msra.mxu0 %v1762_v36 }
  0xaa   : > { %1683 = vmatmul.msk.f32.gmra.mxu3 %vm458_vm1, %v2300_v24  ;;  %974 = vmatpush.msrb.mxu1 %v1732_v42 }
  0xab   : > { %1736 = vmatmul.msk.f32.vlgmr.msrb.gmra.mxu1 %vm392_vm2, %v2264_v15 }
  0xae   : > { %1670 = vmatmul.msk.f32.gmra.mxu0 %vm392_vm2, %v372_v26 }
  0xb1   : > { %1699 = vmatmul.msk.f32.gmra.mxu2 %vm392_vm2, %v2295_v23 }
  0xb2   : > { %1706 = vmatmul.msk.f32.vlgmr.msrb.gmra.mxu3 %vm458_vm1, %v362_v27 }
  0xb3   : > { %1737 = vmatmul.msk.f32.gmra.mxu1 %vm392_vm2, %v2295_v23 }
  0xb6   : > { %1671 = vmatmul.msk.f32.gmra.mxu0 %vm392_vm2, %v373_v29 }
  0xb9   : > { %1700 = vmatmul.msk.f32.gmra.mxu2 %vm392_vm2, %v372_v26 }
  0xba   : > { %1707 = vmatmul.msk.f32.gmra.mxu3 %vm458_vm1, %v363_v30 }
  0xbb   : > { %1738 = vmatmul.msk.f32.gmra.mxu1 %vm392_vm2, %v372_v26 }
  0xbe   : > { %1672 = vmatmul.msk.f32.gmra.mxu0 %vm392_vm2, %v374_v31 }
  0xc1   : > { %1701 = vmatmul.msk.f32.gmra.mxu2 %vm392_vm2, %v373_v29 }
  0xc2   : > { %1708 = vmatmul.msk.f32.gmra.mxu3 %vm458_vm1, %v2270_v17 }
  0xc3   : > { %1739 = vmatmul.msk.f32.gmra.mxu1 %vm392_vm2, %v373_v29 }
  0xc6   : > { %1673 = vmatmul.msk.f32.gmra.mxu0 %vm392_vm2, %v375_v34 }
  0xc9   : > { %1702 = vmatmul.msk.f32.gmra.mxu2 %vm392_vm2, %v374_v31 }
  0xca   : > { %1709 = vmatmul.msk.f32.gmra.mxu3 %vm458_vm1, %v2237_v7 }
  0xcb   : > { %1740 = vmatmul.msk.f32.gmra.mxu1 %vm392_vm2, %v374_v31 }
  0xce   : > { %1674 = vmatmul.msk.f32.gmra.mxu0 %vm392_vm2, %v376_v37 }
  0xd1   : > { %1703 = vmatmul.msk.f32.gmra.mxu2 %vm392_vm2, %v375_v34 }
  0xd2   : > { %1710 = vmatmul.msk.f32.gmra.mxu3 %vm458_vm1, %v2281_v20 }
  0xd3   : > { %1741 = vmatmul.msk.f32.gmra.mxu1 %vm392_vm2, %v375_v34 }
  0xd6   : > { %1675 = vmatmul.msk.f32.gmra.mxu0 %vm392_vm2, %v377_v41 }
  0xd9   : > { %1704 = vmatmul.msk.f32.gmra.mxu2 %vm392_vm2, %v376_v37 }
  0xda   : > { %1711 = vmatmul.msk.f32.gmra.mxu3 %vm458_vm1, %v2240_v8 }
  0xdb   : > { %1742 = vmatmul.msk.f32.gmra.mxu1 %vm392_vm2, %v376_v37 }
  0xde   : > { %1676 = vmatmul.msk.f32.vlgmr.msrb.gmra.mxu0 %vm458_vm1, %v362_v27 }
  0xe1   : > { %1705 = vmatmul.msk.f32.gmra.mxu2 %vm392_vm2, %v377_v41 }
  0xe2   : > { %1712 = vmatmul.msk.f32.gmra.mxu3 %vm458_vm1, %v2284_v21 }
  0xe3   : > { %1743 = vmatmul.msk.f32.gmra.mxu1 %vm392_vm2, %v377_v41 }
  0xe6   : > { %1677 = vmatmul.msk.f32.gmra.mxu0 %vm458_vm1, %v363_v30 }
  0xe9   : > { %1774 = vmatmul.msk.f32.vlgmr.msra.gmra.mxu2 %vm458_vm1, %v362_v27 }
  0xea   : > { %1713 = vmatmul.msk.f32.gmra.mxu3 %vm458_vm1, %v2300_v24 }
  0xee   : > { %1766 = vmatmul.msk.f32.vlgmr.msra.gmra.mxu0 %vm392_vm2, %v2264_v15 }
  0xf1   : > { %1775 = vmatmul.msk.f32.gmra.mxu2 %vm458_vm1, %v363_v30 }
  0xf2   : > { %1744 = vmatmul.msk.f32.vlgmr.msra.gmra.mxu3 %vm458_vm1, %v362_v27 }
  0xf6   : > { %1767 = vmatmul.msk.f32.gmra.mxu0 %vm392_vm2, %v2295_v23  ;;  %v529_v23 = vld [vmem:[%s3407_s4 + $0x28] sm:$0xff] }
  0xf9   : > { %1776 = vmatmul.msk.f32.gmra.mxu2 %vm458_vm1, %v2270_v17 }
  0xfa   : > { %1745 = vmatmul.msk.f32.gmra.mxu3 %vm458_vm1, %v363_v30 }
  0xfe   : > { %1768 = vmatmul.msk.f32.gmra.mxu0 %vm392_vm2, %v372_v26 }
 0x101   : > { %1777 = vmatmul.msk.f32.gmra.mxu2 %vm458_vm1, %v2237_v7 }
 0x102   : > { %1746 = vmatmul.msk.f32.gmra.mxu3 %vm458_vm1, %v2270_v17 }
 0x106   : > { %1769 = vmatmul.msk.f32.gmra.mxu0 %vm392_vm2, %v373_v29 }
 0x109   : > { %1778 = vmatmul.msk.f32.gmra.mxu2 %vm458_vm1, %v2281_v20 }
 0x10a   : > { %1747 = vmatmul.msk.f32.gmra.mxu3 %vm458_vm1, %v2237_v7  ;;  %v528_v7 = vld [vmem:[%s3407_s4 + $0x20] sm:$0xff] }
 0x10e   : > { %1770 = vmatmul.msk.f32.gmra.mxu0 %vm392_vm2, %v374_v31 }
 0x111   : > { %1779 = vmatmul.msk.f32.gmra.mxu2 %vm458_vm1, %v2240_v8 }
 0x112   : > { %1748 = vmatmul.msk.f32.gmra.mxu3 %vm458_vm1, %v2281_v20 }
 0x116   : > { %1771 = vmatmul.msk.f32.gmra.mxu0 %vm392_vm2, %v375_v34 }
 0x119   : > { %1780 = vmatmul.msk.f32.gmra.mxu2 %vm458_vm1, %v2284_v21 }
 0x11a   : > { %1749 = vmatmul.msk.f32.gmra.mxu3 %vm458_vm1, %v2240_v8 }
 0x11b   : > { %v2408_v43 = vpop.f32.mrf.mxu0 }
 0x11c   : > { %v509_v44 = vpop.f32.mrf.mxu2  ;;  %v506_v49 = vpop.f32.mrf.mxu1 }
 0x11d   : > { %v515_v45 = vpop.f32.mrf.mxu3 }
 0x11e   : > { %1772 = vmatmul.msk.f32.gmra.mxu0 %vm392_vm2, %v376_v37 }
 0x121   : > { %1781 = vmatmul.msk.f32.gmra.mxu2 %vm458_vm1, %v2300_v24 }
 0x122   : > { %1750 = vmatmul.msk.f32.gmra.mxu3 %vm458_vm1, %v2284_v21 }
 0x123   : > { %v2415_v46 = vpop.f32.mrf.mxu0 }
 0x124   : > { %v512_v47 = vpop.f32.mrf.mxu2 }
 0x125   : > { %v2417_v48 = vpop.f32.mrf.mxu3 }
 0x126   : > { %1773 = vmatmul.msk.f32.gmra.mxu0 %vm392_vm2, %v377_v41 }
 0x12a   : > { %1751 = vmatmul.msk.f32.gmra.mxu3 %vm458_vm1, %v2300_v24 }
 0x12b   : > { %v440_v50 = vpop.f32.mrf.mxu0 }
 0x12c   : > { %v507_v52 = vadd.f32 %v506_v49, %v440_v50  ;;  %v717_v53 = vpop.f32.mrf.mxu2 }
 0x12d   : > { %v2425_v54 = vpop.f32.mrf.mxu3 }
 0x12e   : > { %v534_v55 = vadd.f32 %v526_v51, %v507_v52 }
 0x130   : > { %v1686_v56 = vmul.f32 -1.442695, %v534_v55  ;;  %v1416_v55 = vld [vmem:[%s3410_s7 + $0x18] sm:$0xff] }
 0x131   : > { %1457 = vmatpush.msra.mxu1 %v1416_v55 }
 0x132   : > { %1864 = vpow2.f32 %v1686_v56 }
 0x133   : > { %v443_v57 = vpop.f32.mrf.mxu0 }
 0x134   : > { %v510_v59 = vadd.f32 %v509_v44, %v443_v57  ;;  %v720_v60 = vpop.f32.mrf.mxu2 }
 0x135   : > { %v758_v61 = vpop.f32.mrf.mxu3 }
 0x136   : > { %v535_v63 = vadd.f32 %v527_v58, %v510_v59  ;;  %v759_v0 = vadd.f32 %v758_v61, %v717_v53  ;;  %v1717_v53 = vld [vmem:[%s3407_s4 + $0x58] sm:$0xff] }
 0x138   : > { %v1865_v1 = vpop.eup %1864  ;;  %v1687_v2 = vmul.f32 -1.442695, %v535_v63  ;;  %v791_v3 = vadd.f32 %v1714_v62, %v759_v0 }
 0x139   : > { %v2433_v4 = vadd.f32 1.0, %v1865_v1 }
 0x13a   : > { %1866 = vpow2.f32 %v1687_v2  ;;  %v1722_v5 = vmul.f32 -1.442695, %v791_v3 }
 0x13b   : > { %1868 = vrcp.f32 %v2433_v4  ;;  %v446_v6 = vpop.f32.mrf.mxu0  ;;  %v611_v44 = vand.u32 2147483647, %v2433_v4  ;;  %v613_v49 = vand.u32 2147483648, %v2433_v4  ;;  %vm607_vm3 = vweird.f32 %v2433_v4 }
 0x13c   : > { %1870 = vpow2.f32 %v1722_v5  ;;  %v513_v8 = vadd.f32 %v512_v47, %v446_v6  ;;  %v723_v9 = vpop.f32.mrf.mxu2 }
 0x13d   : > { %v761_v10 = vpop.f32.mrf.mxu3  ;;  %vm2486_vm4 = vcmp.eq.f32.partialorder %v611_v44, 8.507059e+37  ;;  %v614_v63 = vor.u32 1.1754944e-38, %v613_v49 }
 0x13e   : > { %v536_v12 = vadd.f32 %v528_v7, %v513_v8  ;;  %v762_v13 = vadd.f32 %v761_v10, %v720_v60 }
 0x140   : > { %v1867_v14 = vpop.eup %1866  ;;  %v1688_v15 = vmul.f32 -1.442695, %v536_v12  ;;  %v792_v16 = vadd.f32 %v1715_v11, %v762_v13 }
 0x141   : > { %v2442_v17 = vpop.eup %1868  ;;  %v2444_v18 = vadd.f32 1.0, %v1867_v14 }
 0x142   : > { %v1871_v19 = vpop.eup %1870  ;;  %1872 = vpow2.f32 %v1688_v15  ;;  %v1723_v20 = vmul.f32 -1.442695, %v792_v16  ;;  %v603_v26 = vmul.f32 %v2442_v17, %v2433_v4  ;;  %vm608_vm5 = vweird.f32 %v2442_v17 }
 0x143   : > { %1874 = vrcp.f32 %v2444_v18  ;;  %v2447_v21 = vadd.f32 1.0, %v1871_v19  ;;  %v449_v22 = vpop.f32.mrf.mxu0  ;;  %vm622_vm6 = vweird.f32 %v2444_v18  ;;  %v626_v7 = vand.u32 2147483647, %v2444_v18  ;;  %v531_v19 = vld [vmem:[%s3407_s4 + $0x38] sm:$0xff]  ;;  %vm2519_vm8 = vmor %vm607_vm3, %vm608_vm5 }
 0x144   : > { %1876 = vpow2.f32 %v1723_v20  ;;  %v516_v24 = vadd.f32 %v515_v45, %v449_v22  ;;  %v726_v25 = vpop.f32.mrf.mxu2  ;;  %v604_v35 = vsub.f32 1.0, %v603_v26  ;;  %v530_v45 = vld [vmem:[%s3407_s4 + $0x30] sm:$0xff]  ;;  %v628_v8 = vand.u32 2147483648, %v2444_v18  ;;  %v1718_v26 = vld [vmem:[%s3407_s4 + $0x60] sm:$0xff] }
 0x145   : > { %1878 = vrcp.f32 %v2447_v21  ;;  %v764_v27 = vpop.f32.mrf.mxu3  ;;  %v842_v61 = vand.u32 2147483648, %v2447_v21  ;;  %v840_v12 = vand.u32 2147483647, %v2447_v21  ;;  %vm836_vm7 = vweird.f32 %v2447_v21 }
 0x146   : > { %v537_v29 = vadd.f32 %v529_v23, %v516_v24  ;;  %v765_v30 = vadd.f32 %v764_v27, %v723_v9  ;;  %v605_v56 = vmul.f32 %v2442_v17, %v604_v35  ;;  %vm2533_vm9 = vcmp.eq.f32.partialorder %v626_v7, 8.507059e+37 }
 0x147   : > { %v2508_v15 = vor.u32 1.1754944e-38, %v842_v61  ;;  %vm2539_vm10 = vcmp.eq.f32.partialorder %v840_v12, 8.507059e+37 }
 0x148   : > { %v1873_v31 = vpop.eup %1872  ;;  %v1689_v32 = vmul.f32 -1.442695, %v537_v29  ;;  %v793_v33 = vadd.f32 %v1716_v28, %v765_v30  ;;  %v606_v3 = vadd.f32 %v2442_v17, %v605_v56 }
 0x149   : > { %v2458_v34 = vpop.eup %1874  ;;  %v2460_v37 = vadd.f32 1.0, %v1873_v31 }
 0x14a   : > { %v1877_v36 = vpop.eup %1876  ;;  %1880 = vpow2.f32 %v1689_v32  ;;  %v1724_v38 = vmul.f32 -1.442695, %v793_v33  ;;  %v618_v40 = vmul.f32 %v2458_v34, %v2444_v18  ;;  %v610_v27 = vsel %vm2519_vm8, %v2442_v17, %v606_v3  ;;  %v1415_v3 = vld [vmem:[%s3410_s7 + $0x10] sm:$0xff] }
 0x14b   : > { %v2462_v39 = vpop.eup %1878  ;;  %v2466_v41 = vadd.f32 1.0, %v1877_v36  ;;  %v452_v42 = vpop.f32.mrf.mxu0  ;;  %vm623_vm11 = vweird.f32 %v2458_v34  ;;  %v2548_v35 = vsel %vm2486_vm4, %v614_v63, %v610_v27  ;;  %v629_v36 = vor.u32 1.1754944e-38, %v628_v8  ;;  %1458 = vmatpush.msra.mxu1 %v1415_v3 }
 0x14c   : > { %1882 = vpow2.f32 %v1724_v38  ;;  %v729_v47 = vpop.f32.mrf.mxu2  ;;  %v832_v50 = vmul.f32 %v2462_v39, %v2447_v21  ;;  %v519_v51 = vadd.f32 %v2417_v48, %v452_v42  ;;  %v619_v58 = vsub.f32 1.0, %v618_v40  ;;  %vm2560_vm14 = vmor %vm622_vm6, %vm623_vm11 }
 0x14d   : > { %1884 = vrcp.f32 %v2466_v41  ;;  %v767_v52 = vpop.f32.mrf.mxu3  ;;  %v857_v28 = vand.u32 2147483648, %v2466_v41  ;;  %vm837_vm12 = vweird.f32 %v2462_v39  ;;  %vm851_vm13 = vweird.f32 %v2466_v41 }
 0x14e   : > { %1886 = vrcp.f32 %v2460_v37  ;;  %v768_v57 = vadd.f32 %v767_v52, %v726_v25  ;;  %v538_v59 = vadd.f32 %v530_v45, %v519_v51  ;;  %v833_v0 = vsub.f32 1.0, %v832_v50  ;;  %vm2576_vm15 = vmor %vm836_vm7, %vm837_vm12 }
 0x14f   : > { %v620_v13 = vmul.f32 %v2458_v34, %v619_v58  ;;  %v855_v44 = vand.u32 2147483647, %v2466_v41  ;;  %v2556_v49 = vor.u32 1.1754944e-38, %v857_v28  ;;  %v641_v52 = vand.u32 2147483647, %v2460_v37 }
 0x150   : > { %v1881_v60 = vpop.eup %1880  ;;  %v794_v62 = vadd.f32 %v1717_v53, %v768_v57  ;;  %v1690_v2 = vmul.f32 -1.442695, %v538_v59  ;;  %v834_v23 = vmul.f32 %v2462_v39, %v833_v0  ;;  %vm637_vm1 = vweird.f32 %v2460_v37 }
 0x151   : > { %v2492_v1 = vadd.f32 1.0, %v1881_v60  ;;  %v621_v33 = vadd.f32 %v2458_v34, %v620_v13  ;;  %vm2605_vm3 = vcmp.eq.f32.partialorder %v855_v44, 8.507059e+37  ;;  %v378_v13 = vld [vmem:[#allocation3] sm:$0xff] }
 0x152   : > { %v1883_v5 = vpop.eup %1882  ;;  %v1725_v6 = vmul.f32 -1.442695, %v794_v62  ;;  %v835_v42 = vadd.f32 %v2462_v39, %v834_v23 }
 0x153   : > { %v2498_v9 = vpop.eup %1884  ;;  %1888 = vrcp.f32 %v2492_v1  ;;  %v2501_v10 = vadd.f32 1.0, %v1883_v5  ;;  %v455_v11 = vpop.f32.mrf.mxu0  ;;  %v625_v58 = vsel %vm2560_vm14, %v2458_v34, %v621_v33  ;;  %v524_v34 = vld [vmem:[%s3407_s4] sm:$0xff]  ;;  %v525_v33 = vld [vmem:[%s3407_s4 + $0x8] sm:$0xff]  ;;  %vm652_vm11 = vweird.f32 %v2492_v1 }
 0x154   : > { %v2505_v14 = vpop.eup %1886  ;;  %v847_v16 = vmul.f32 %v2498_v9, %v2466_v41  ;;  %1890 = vpow2.f32 %v1690_v2  ;;  %v732_v20 = vpop.f32.mrf.mxu2  ;;  %v522_v24 = vadd.f32 %v2425_v54, %v455_v11  ;;  %vm852_vm0 = vweird.f32 %v2498_v9  ;;  %v1719_v2 = vld [vmem:[%s3407_s4 + $0x68] sm:$0xff] }
 0x155   : > { %1892 = vrcp.f32 %v2501_v10  ;;  %v770_v25 = vpop.f32.mrf.mxu3  ;;  %v633_v54 = vmul.f32 %v2505_v14, %v2460_v37  ;;  %v872_v60 = vand.u32 2147483648, %v2501_v10  ;;  %v839_v5 = vsel %vm2576_vm15, %v2462_v39, %v835_v42  ;;  %vm2622_vm4 = vmor %vm851_vm13, %vm852_vm0 }
 0x156   : > { %v848_v4 = vsub.f32 1.0, %v847_v16  ;;  %1894 = vpow2.f32 %v1725_v6  ;;  %v771_v29 = vadd.f32 %v770_v25, %v729_v47  ;;  %v539_v31 = vadd.f32 %v531_v19, %v522_v24 }
 0x157   : > { %v634_v55 = vsub.f32 1.0, %v633_v54  ;;  %v2611_v12 = vsel %vm2533_vm9, %v629_v36, %v625_v58  ;;  %v844_v16 = vsel %vm2539_vm10, %v2508_v15, %v839_v5  ;;  %v870_v19 = vand.u32 2147483647, %v2501_v10 }
 0x158   : > { %v795_v17 = vadd.f32 %v1718_v26, %v771_v29  ;;  %v1691_v40 = vmul.f32 -1.442695, %v539_v31  ;;  %v849_v47 = vmul.f32 %v2498_v9, %v848_v4  ;;  %vm866_vm5 = vweird.f32 %v2501_v10 }
 0x159   : > { %v2550_v38 = vpop.eup %1888  ;;  %vm638_vm6 = vweird.f32 %v2505_v14  ;;  %v873_v27 = vor.u32 1.1754944e-38, %v872_v60  ;;  %v2634_v30 = vmul.f32 %v844_v16, %v378_v13  ;;  %v643_v54 = vand.u32 2147483648, %v2460_v37 }
 0x15a   : > { %v1891_v45 = vpop.eup %1890  ;;  %v1726_v50 = vmul.f32 -1.442695, %v795_v17  ;;  %1896 = vpow2.f32 %v1691_v40  ;;  %v648_v21 = vmul.f32 %v2550_v38, %v2492_v1  ;;  %vm2644_vm8 = vcmp.eq.f32.partialorder %v870_v19, 8.507059e+37  ;;  %vm2675_vm10 = vmor %vm637_vm1, %vm638_vm6  ;;  %v1782_v19 = vld [vmem:[%s3407_s4 + $0xc0] sm:$0xff] }
 0x15b   : > { %v2565_v53 = vpop.eup %1892  ;;  %v2567_v56 = vadd.f32 1.0, %v1891_v45  ;;  %v500_v57 = vpop.f32.mrf.mxu0  ;;  %vm2666_vm9 = vcmp.eq.f32.partialorder %v641_v52, 8.507059e+37  ;;  %vm653_vm13 = vweird.f32 %v2550_v38 }
 0x15c   : > { %v1895_v59 = vpop.eup %1894  ;;  %v862_v48 = vmul.f32 %v2565_v53, %v2501_v10  ;;  %1898 = vpow2.f32 %v1726_v50  ;;  %v735_v61 = vpop.f32.mrf.mxu2  ;;  %v501_v63 = vadd.f32 %v500_v57, %v2408_v43  ;;  %v850_v43 = vadd.f32 %v2498_v9, %v849_v47  ;;  %vm2747_vm0 = vmor %vm652_vm11, %vm653_vm13 }
 0x15d   : > { %v2589_v62 = vadd.f32 1.0, %v1895_v59  ;;  %v773_v0 = vpop.f32.mrf.mxu3  ;;  %1900 = vrcp.f32 %v2567_v56  ;;  %v649_v26 = vsub.f32 1.0, %v648_v21  ;;  %vm867_vm7 = vweird.f32 %v2565_v53  ;;  %v2654_v45 = vpop.f32.mrf.mxu1 }
 0x15e   : > { %v863_v6 = vsub.f32 1.0, %v862_v48  ;;  %v774_v7 = vadd.f32 %v773_v0, %v732_v20  ;;  %v532_v8 = vadd.f32 %v524_v34, %v501_v63  ;;  %v635_v20 = vmul.f32 %v2505_v14, %v634_v55  ;;  %v1720_v55 = vld [vmem:[%s3407_s4 + $0x70] sm:$0xff]  ;;  %vm2684_vm12 = vmor %vm866_vm5, %vm867_vm7  ;;  %v1414_v0 = vld [vmem:[%s3410_s7 + $0x8] sm:$0xff] }
 0x15f   : > { %1902 = vrcp.f32 %v2589_v62  ;;  %v854_v28 = vsel %vm2622_vm4, %v2498_v9, %v850_v43  ;;  %v887_v51 = vand.u32 2147483648, %v2589_v62  ;;  %v650_v58 = vmul.f32 %v2550_v38, %v649_v26  ;;  %1459 = vmatpush.msra.mxu1 %v1414_v0 }
 0x160   : > { %v796_v39 = vadd.f32 %v1719_v2, %v774_v7  ;;  %v1897_v22 = vpop.eup %1896  ;;  %v864_v24 = vmul.f32 %v2565_v53, %v863_v6  ;;  %v1684_v25 = vmul.f32 -1.442695, %v532_v8  ;;  %v636_v36 = vadd.f32 %v2505_v14, %v635_v20 }
 0x161   : > { %v2651_v42 = vadd.f32 1.0, %v1897_v22  ;;  %v859_v47 = vsel %vm2605_vm3, %v2556_v49, %v854_v28  ;;  %v644_v48 = vor.u32 1.1754944e-38, %v643_v54  ;;  %v2704_v3 = vor.u32 1.1754944e-38, %v887_v51 }
 0x162   : > { %v1899_v15 = vpop.eup %1898  ;;  %v1727_v4 = vmul.f32 -1.442695, %v796_v39  ;;  %1904 = vpow2.f32 %v1684_v25  ;;  %v865_v50 = vadd.f32 %v2565_v53, %v864_v24  ;;  %v2710_v6 = vadd.f32 %v2550_v38, %v650_v58  ;;  %v1721_v24 = vld [vmem:[%s3407_s4 + $0x78] sm:$0xff] }
 0x163   : > { %v2632_v41 = vadd.f32 1.0, %v1899_v15  ;;  %v503_v29 = vpop.f32.mrf.mxu0  ;;  %v2637_v31 = vpop.eup %1900  ;;  %v380_v15 = vld [vmem:[#allocation3 + $0x10] sm:$0xff]  ;;  %v656_v26 = vand.u32 2147483647, %v2492_v1  ;;  %vm881_vm15 = vweird.f32 %v2589_v62  ;;  %v658_v9 = vand.u32 2147483648, %v2492_v1 }
 0x164   : > { %v504_v32 = vadd.f32 %v503_v29, %v2415_v46  ;;  %v738_v17 = vpop.f32.mrf.mxu2  ;;  %v379_v46 = vld [vmem:[#allocation3 + $0x8] sm:$0xff]  ;;  %v663_v60 = vmul.f32 %v2637_v31, %v2567_v56  ;;  %v869_v2 = vsel %vm2684_vm12, %v2565_v53, %v865_v50 }
 0x165   : > { %v2649_v40 = vpop.eup %1902  ;;  %1906 = vrcp.f32 %v2632_v41  ;;  %v776_v44 = vpop.f32.mrf.mxu3  ;;  %v2692_v34 = vmul.f32 %v859_v47, %v379_v46  ;;  %v902_v43 = vand.u32 2147483648, %v2632_v41  ;;  %v874_v20 = vsel %vm2644_vm8, %v873_v27, %v869_v2 }
 0x166   : > { %1908 = vpow2.f32 %v1727_v4  ;;  %v533_v59 = vadd.f32 %v525_v33, %v504_v32  ;;  %v777_v18 = vadd.f32 %v776_v44, %v735_v61  ;;  %v877_v37 = vmul.f32 %v2649_v40, %v2589_v62  ;;  %v2741_v33 = vpop.f32.mrf.mxu1 }
 0x167   : > { %v640_v61 = vsel %vm2675_vm10, %v2505_v14, %v636_v36  ;;  %1910 = vrcp.f32 %v2651_v42  ;;  %v885_v14 = vand.u32 2147483647, %v2589_v62  ;;  %v664_v39 = vsub.f32 1.0, %v663_v60 }
 0x168   : > { %v1905_v21 = vpop.eup %1904  ;;  %v1685_v10 = vmul.f32 -1.442695, %v533_v59  ;;  %v797_v63 = vadd.f32 %v1720_v55, %v777_v18  ;;  %v878_v13 = vsub.f32 1.0, %v877_v37  ;;  %vm882_vm14 = vweird.f32 %v2649_v40 }
 0x169   : > { %v2706_v5 = vadd.f32 1.0, %v1905_v21  ;;  %v2733_v27 = vsel %vm2666_vm9, %v644_v48, %v640_v61  ;;  %v2738_v54 = vor.u32 1.1754944e-38, %v902_v43  ;;  %v2752_v44 = vmul.f32 %v874_v20, %v380_v15  ;;  %vm2812_vm7 = vmor %vm881_vm15, %vm882_vm14 }
 0x16a   : > { %1912 = vpow2.f32 %v1685_v10  ;;  %v1728_v8 = vmul.f32 -1.442695, %v797_v63  ;;  %v900_v46 = vand.u32 2147483647, %v2632_v41  ;;  %v655_v47 = vsel %vm2747_vm0, %v2550_v38, %v2710_v6  ;;  %v1783_v6 = vld [vmem:[%s3407_s4 + $0xc8] sm:$0xff] }
 0x16b   : > { %v2712_v7 = vpop.eup %1906  ;;  %v1091_v11 = vpop.f32.mrf.mxu0  ;;  %1914 = vrcp.f32 %v2706_v5  ;;  %v879_v51 = vmul.f32 %v2649_v40, %v878_v13  ;;  %vm2760_vm1 = vcmp.eq.f32.partialorder %v656_v26, 8.507059e+37  ;;  %v2765_v1 = vmul.f32 %v2637_v31, %v664_v39 }
 0x16c   : > { %v1909_v53 = vpop.eup %1908  ;;  %v1132_v16 = vpop.f32.mrf.mxu2  ;;  %1916 = vpow2.f32 %v1728_v8  ;;  %v892_v4 = vmul.f32 %v2712_v7, %v2632_v41  ;;  %v581_v60 = vand.u32 2147483647, %v2706_v5  ;;  %vm2778_vm3 = vcmp.eq.f32.partialorder %v885_v14, 8.507059e+37 }
 0x16d   : > { %v2722_v22 = vadd.f32 1.0, %v1909_v53  ;;  %v779_v23 = vpop.f32.mrf.mxu3  ;;  %v1133_v25 = vadd.f32 %v1132_v16, %v1091_v11  ;;  %v2735_v29 = vpop.eup %1910  ;;  %v659_v21 = vor.u32 1.1754944e-38, %v658_v9  ;;  %v583_v0 = vand.u32 2147483648, %v2706_v5  ;;  %v1752_v16 = vld [vmem:[%s3407_s4 + $0x80] sm:$0xff] }
 0x16e   : > { %v780_v28 = vadd.f32 %v779_v23, %v738_v17  ;;  %v2771_v59 = vmul.f32 %v2735_v29, %v2651_v42  ;;  %v893_v18 = vsub.f32 1.0, %v892_v4  ;;  %v880_v53 = vadd.f32 %v2649_v40, %v879_v51  ;;  %v2824_v17 = vpop.f32.mrf.mxu1 }
 0x16f   : > { %1918 = vrcp.f32 %v2722_v22  ;;  %v1165_v32 = vadd.f32 %v1782_v19, %v1133_v25  ;;  %v917_v10 = vand.u32 2147483648, %v2722_v22  ;;  %vm897_vm4 = vweird.f32 %v2712_v7  ;;  %v1413_v19 = vld [vmem:[%s3410_s7] sm:$0xff] }
 0x170   : > { %v798_v36 = vadd.f32 %v1721_v24, %v780_v28  ;;  %v1913_v50 = vpop.eup %1912  ;;  %v679_v39 = vsub.f32 1.0, %v2771_v59  ;;  %v894_v13 = vmul.f32 %v2712_v7, %v893_v18  ;;  %vm577_vm5 = vweird.f32 %v2706_v5  ;;  %1460 = vmatpush.msra.mxu1 %v1413_v19 }
 0x171   : > { %v1790_v55 = vmul.f32 -1.442695, %v1165_v32  ;;  %v2767_v58 = vpop.eup %1914  ;;  %v2773_v49 = vadd.f32 1.0, %v1913_v50  ;;  %vm896_vm6 = vweird.f32 %v2632_v41  ;;  %v2816_v26 = vor.u32 1.1754944e-38, %v917_v10  ;;  %v1786_v41 = vld [vmem:[%s3407_s4 + $0xe0] sm:$0xff] }
 0x172   : > { %v1729_v38 = vmul.f32 -1.442695, %v798_v36  ;;  %v1917_v48 = vpop.eup %1916  ;;  %v573_v52 = vmul.f32 %v2767_v58, %v2706_v5  ;;  %vm2819_vm8 = vcmp.eq.f32.partialorder %v581_v60, 8.507059e+37  ;;  %v584_v28 = vor.u32 1.1754944e-38, %v583_v0  ;;  %vm2891_vm15 = vmor %vm896_vm6, %vm897_vm4 }
 0x173   : > { %1920 = vpow2.f32 %v1790_v55  ;;  %v1094_v37 = vpop.f32.mrf.mxu0  ;;  %v2784_v63 = vadd.f32 1.0, %v1917_v48  ;;  %vm578_vm9 = vweird.f32 %v2767_v58  ;;  %v884_v62 = vsel %vm2812_vm7, %v2649_v40, %v880_v53 }
 0x174   : > { %1922 = vrcp.f32 %v2773_v49  ;;  %v1135_v2 = vpop.f32.mrf.mxu2  ;;  %v574_v14 = vsub.f32 1.0, %v573_v52  ;;  %v2831_v9 = vsel %vm2760_vm1, %v659_v21, %v655_v47  ;;  %v598_v18 = vand.u32 2147483648, %v2773_v49  ;;  %vm2859_vm11 = vmor %vm577_vm5, %vm578_vm9 }
 0x175   : > { %v2790_v43 = vpop.eup %1918  ;;  %1924 = vpow2.f32 %v1729_v38  ;;  %v1017_v8 = vpop.f32.mrf.mxu3  ;;  %v1136_v11 = vadd.f32 %v1135_v2, %v1094_v37  ;;  %v932_v50 = vand.u32 2147483648, %v2784_v63  ;;  %v381_v37 = vld [vmem:[#allocation3 + $0x18] sm:$0xff]  ;;  %v889_v21 = vsel %vm2778_vm3, %v2704_v3, %v884_v62 }
 0x176   : > { %v907_v20 = vmul.f32 %v2790_v43, %v2722_v22  ;;  %v575_v23 = vmul.f32 %v2767_v58, %v574_v14  ;;  %v1018_v24 = vadd.f32 %v1017_v8, %v2654_v45  ;;  %1926 = vrcp.f32 %v2784_v63 }
 0x177   : > { %v1166_v25 = vadd.f32 %v1783_v6, %v1136_v11  ;;  %v895_v10 = vadd.f32 %v2712_v7, %v894_v13  ;;  %vm2851_vm10 = vcmp.eq.f32.partialorder %v900_v46, 8.507059e+37  ;;  %vm592_vm12 = vweird.f32 %v2773_v49  ;;  %v1753_v13 = vld [vmem:[%s3407_s4 + $0x88] sm:$0xff] }
 0x178   : > { %v1050_v32 = vadd.f32 %v1752_v16, %v1018_v24  ;;  %v576_v55 = vadd.f32 %v2767_v58, %v575_v23  ;;  %v908_v48 = vsub.f32 1.0, %v907_v20  ;;  %v596_v3 = vand.u32 2147483647, %v2773_v49  ;;  %v1784_v16 = vld [vmem:[%s3407_s4 + $0xd0] sm:$0xff] }
 0x179   : > { %v1921_v45 = vpop.eup %1920  ;;  %v1791_v40 = vmul.f32 -1.442695, %v1166_v25  ;;  %v915_v14 = vand.u32 2147483647, %v2722_v22  ;;  %vm912_vm13 = vweird.f32 %v2790_v43  ;;  %v2873_v8 = vor.u32 1.1754944e-38, %v598_v18 }
 0x17a   : > { %v2833_v36 = vpop.eup %1922  ;;  %v2836_v51 = vadd.f32 1.0, %v1921_v45  ;;  %1928 = vtanh.f32 %v1050_v32  ;;  %v580_v5 = vsel %vm2859_vm11, %v2767_v58, %v576_v55  ;;  %v909_v11 = vmul.f32 %v2790_v43, %v908_v48 }
 0x17b   : > { %v1925_v38 = vpop.eup %1924  ;;  %v588_v52 = vmul.f32 %v2833_v36, %v2773_v49  ;;  %v1097_v57 = vpop.f32.mrf.mxu0  ;;  %vm911_vm14 = vweird.f32 %v2722_v22  ;;  %v2877_v53 = vor.u32 1.1754944e-38, %v932_v50  ;;  %v2885_v19 = vmul.f32 %v889_v21, %v381_v37 }
 0x17c   : > { %v2842_v47 = vadd.f32 1.0, %v1925_v38  ;;  %1930 = vrcp.f32 %v2836_v51  ;;  %v1138_v60 = vpop.f32.mrf.mxu2  ;;  %v2866_v46 = vpop.eup %1926  ;;  %v1214_v20 = vand.u32 2147483647, %v2836_v51  ;;  %v585_v32 = vsel %vm2819_vm8, %v584_v28, %v580_v5  ;;  %v1785_v5 = vld [vmem:[%s3407_s4 + $0xd8] sm:$0xff]  ;;  %vm2958_vm7 = vmor %vm911_vm14, %vm912_vm13 }
 0x17d   : > { %v589_v2 = vsub.f32 1.0, %v588_v52  ;;  %v1020_v61 = vpop.f32.mrf.mxu3  ;;  %v1139_v25 = vadd.f32 %v1138_v60, %v1097_v57  ;;  %v922_v45 = vmul.f32 %v2866_v46, %v2784_v63  ;;  %vm593_vm0 = vweird.f32 %v2833_v36 }
 0x17e   : > { %1932 = vrcp.f32 %v2842_v47  ;;  %v1021_v24 = vadd.f32 %v1020_v61, %v2741_v33  ;;  %vm2903_vm1 = vcmp.eq.f32.partialorder %v596_v3, 8.507059e+37  ;;  %v899_v62 = vsel %vm2891_vm15, %v2712_v7, %v895_v10  ;;  %v1754_v61 = vld [vmem:[%s3407_s4 + $0x90] sm:$0xff]  ;;  %vm2944_vm5 = vmor %vm592_vm12, %vm593_vm0 }
 0x17f   : > { %1934 = vpow2.f32 %v1791_v40  ;;  %v590_v23 = vmul.f32 %v2833_v36, %v589_v2  ;;  %vm1210_vm3 = vweird.f32 %v2836_v51  ;;  %v1167_v18 = vadd.f32 %v1784_v16, %v1139_v25  ;;  %v2918_v40 = vpop.f32.mrf.mxu1  ;;  %v382_v25 = vld [vmem:[#allocation3 + $0x20] sm:$0xff] }
 0x180   : > { %v1929_v15 = vpop.eup %1928  ;;  %v1051_v55 = vadd.f32 %v1753_v13, %v1021_v24  ;;  %v947_v4 = vand.u32 2147483648, %v2842_v47  ;;  %v1216_v38 = vand.u32 2147483648, %v2836_v51  ;;  %vm2922_vm4 = vcmp.eq.f32.partialorder %v1214_v20, 8.507059e+37 }
 0x181   : > { %v1333_v33 = vmul.f32 %v1929_v15, %v585_v32  ;;  %v591_v48 = vadd.f32 %v2833_v36, %v590_v23  ;;  %v1792_v37 = vmul.f32 -1.442695, %v1167_v18  ;;  %v923_v2 = vsub.f32 1.0, %v922_v45 }
 0x182   : > { %v2910_v50 = vpop.eup %1930  ;;  %1936 = vtanh.f32 %v1051_v55  ;;  %v904_v13 = vsel %vm2851_vm10, %v2738_v54, %v899_v62  ;;  %v2965_v15 = vor.u32 1.1754944e-38, %v947_v4  ;;  %v1217_v45 = vor.u32 1.1754944e-38, %v1216_v38 }
 0x183   : > { %v1206_v28 = vmul.f32 %v2910_v50, %v2836_v51  ;;  %v1100_v52 = vpop.f32.mrf.mxu0  ;;  %v1341_v60 = vadd.f32 %v1333_v33, %v2634_v30  ;;  %v910_v30 = vadd.f32 %v2790_v43, %v909_v11  ;;  %vm1211_vm6 = vweird.f32 %v2910_v50 }
 0x184   : > { %v2920_v7 = vpop.eup %1932  ;;  %v1141_v21 = vpop.f32.mrf.mxu2  ;;  %v595_v0 = vsel %vm2944_vm5, %v2833_v36, %v591_v48  ;;  %v2972_v33 = vmul.f32 %v2866_v46, %v923_v2  ;;  %vm1212_vm8 = vmor %vm1210_vm3, %vm1211_vm6  ;;  %vm916_vm9 = vcmp.eq.f32.partialorder %v915_v14, 8.507059e+37  ;;  %vm668_vm11 = vweird.f32 %v2637_v31 }
 0x185   : > { %v1935_v10 = vpop.eup %1934  ;;  %v1207_v6 = vsub.f32 1.0, %v1206_v28  ;;  %v1023_v3 = vpop.f32.mrf.mxu3  ;;  %1938 = vtanh.f32 %v1341_v60  ;;  %1373 = vst.msk [vmem:[#allocation3] sm:$0xff] %vm392_vm2, %v1341_v60  ;;  %v1142_v23 = vadd.f32 %v1141_v21, %v1100_v52  ;;  %v914_v32 = vsel %vm2958_vm7, %v2790_v43, %v910_v30  ;;  %v1755_v21 = vld [vmem:[%s3407_s4 + $0x98] sm:$0xff] }
 0x186   : > { %v2938_v16 = vadd.f32 1.0, %v1935_v10  ;;  %v1024_v20 = vadd.f32 %v1023_v3, %v2824_v17  ;;  %1940 = vpow2.f32 %v1792_v37  ;;  %v937_v17 = vmul.f32 %v2920_v7, %v2842_v47 }
 0x187   : > { %v1208_v54 = vmul.f32 %v2910_v50, %v1207_v6  ;;  %v1168_v24 = vadd.f32 %v1785_v5, %v1142_v23  ;;  %v600_v55 = vsel %vm2903_vm1, %v2873_v8, %v595_v0  ;;  %v2982_v43 = vmul.f32 %v904_v13, %v382_v25  ;;  %v988_v6 = vpop.f32.mrf.mxu1 }
 0x188   : > { %1942 = vrcp.f32 %v2938_v16  ;;  %v1052_v11 = vadd.f32 %v1754_v61, %v1024_v20  ;;  %v1937_v62 = vpop.eup %1936  ;;  %v938_v52 = vsub.f32 1.0, %v937_v17  ;;  %v919_v60 = vsel %vm916_vm9, %v2816_v26, %v914_v32 }
 0x189   : > { %v1209_v36 = vadd.f32 %v2910_v50, %v1208_v54  ;;  %v1793_v18 = vmul.f32 -1.442695, %v1168_v24  ;;  %v1334_v4 = vmul.f32 %v1937_v62, %v600_v55  ;;  %vm1225_vm10 = vweird.f32 %v2938_v16  ;;  %v1787_v62 = vld [vmem:[%s3407_s4 + $0xe8] sm:$0xff] }
 0x18a   : > { %1944 = vtanh.f32 %v1052_v11  ;;  %v1229_v26 = vand.u32 2147483647, %v2938_v16  ;;  %v1231_v5 = vand.u32 2147483648, %v2938_v16  ;;  %v3017_v23 = vadd.f32 %v2637_v31, %v2765_v1  ;;  %v383_v11 = vld [vmem:[#allocation3 + $0x28] sm:$0xff] }
 0x18b   : > { %v1103_v28 = vpop.f32.mrf.mxu0  ;;  %v1213_v38 = vsel %vm1212_vm8, %v2910_v50, %v1209_v36  ;;  %v1939_v48 = vpop.eup %1938  ;;  %1946 = vpow2.f32 %v1793_v18  ;;  %v1381_v50 = vld [vmem:[%s3408_s5] sm:$0xff]  ;;  %v1342_v22 = vadd.f32 %v1334_v4, %v2692_v34  ;;  %vm927_vm12 = vweird.f32 %v2866_v46 }
 0x18c   : > { %v1144_v51 = vpop.f32.mrf.mxu2  ;;  %v1218_v8 = vsel %vm2922_vm4, %v1217_v45, %v1213_v38  ;;  %v1941_v37 = vpop.eup %1940  ;;  %v1397_v34 = vld [vmem:[%s3409_s6] sm:$0xff]  ;;  %v3023_v25 = vmul.f32 %v2920_v7, %v938_v52  ;;  %vm667_vm14 = vweird.f32 %v2567_v56  ;;  %vm926_vm15 = vweird.f32 %v2784_v63 }
 0x18d   : > { %v1026_v14 = vpop.f32.mrf.mxu3  ;;  %v1145_v10 = vadd.f32 %v1144_v51, %v1103_v28  ;;  %v1357_v2 = vmul.f32 %v1939_v48, %v1218_v8  ;;  %v3002_v3 = vadd.f32 1.0, %v1941_v37  ;;  %1948 = vtanh.f32 %v1342_v22  ;;  %1374 = vst.msk [vmem:[#allocation3 + $0x8] sm:$0xff] %vm392_vm2, %v1342_v22  ;;  %vm3044_vm1 = vmor %vm667_vm14, %vm668_vm11  ;;  %v1756_v52 = vld [vmem:[%s3407_s4 + $0xa0] sm:$0xff] }
 0x18e   : > { %v3000_v57 = vpop.eup %1942  ;;  %v1027_v61 = vadd.f32 %v1026_v14, %v2918_v40  ;;  %vm3036_vm0 = vcmp.eq.f32.partialorder %v1229_v26, 8.507059e+37  ;;  %v3040_v18 = vmul.f32 %v919_v60, %v383_v11  ;;  %v671_v28 = vand.u32 2147483647, %v2567_v56  ;;  %v1382_v26 = vld [vmem:[%s3408_s5 + $0x8] sm:$0xff]  ;;  %vm3108_vm7 = vmor %vm926_vm15, %vm927_vm12 }
 0x18f   : > { %v1221_v13 = vmul.f32 %v3000_v57, %v2938_v16  ;;  %v1169_v30 = vadd.f32 %v1786_v41, %v1145_v10  ;;  %v1389_v58 = vmul.f32 %v1381_v50, %v1357_v2  ;;  %1950 = vrcp.f32 %v3002_v3  ;;  %1365 = vst.msk [vmem:[#allocation2] sm:$0xff] %vm392_vm2, %v1357_v2  ;;  %v991_v2 = vpop.f32.mrf.mxu1 }
 0x190   : > { %v1945_v20 = vpop.eup %1944  ;;  %v1053_v40 = vadd.f32 %v1755_v21, %v1027_v61  ;;  %vm1226_vm13 = vweird.f32 %v3000_v57  ;;  %v670_v8 = vsel %vm3044_vm1, %v2637_v31, %v3017_v23  ;;  %v673_v50 = vand.u32 2147483648, %v2567_v56 }
 0x191   : > { %v1222_v54 = vsub.f32 1.0, %v1221_v13  ;;  %v1335_v0 = vmul.f32 %v1945_v20, %v2548_v35  ;;  %v1794_v49 = vmul.f32 -1.442695, %v1169_v30  ;;  %v1405_v17 = vadd.f32 %v1397_v34, %v1389_v58  ;;  %v1947_v24 = vpop.eup %1946  ;;  %vm1227_vm3 = vmor %vm1225_vm10, %vm1226_vm13 }
 0x192   : > { %1952 = vtanh.f32 %v1053_v40  ;;  %v3028_v36 = vadd.f32 1.0, %v1947_v24  ;;  %vm1240_vm4 = vweird.f32 %v3002_v3  ;;  %v1244_v22 = vand.u32 2147483647, %v3002_v3 }
 0x193   : > { %v1343_v1 = vadd.f32 %v1335_v0, %v2752_v44  ;;  %1954 = vpow2.f32 %v1794_v49  ;;  %1798 = vmatmul.msk.f32.vlgmr.msra.gmra.mxu1 %vm392_vm2, %v1405_v17  ;;  %v1106_v35 = vpop.f32.mrf.mxu0  ;;  %v1223_v45 = vmul.f32 %v3000_v57, %v1222_v54  ;;  %v1232_v44 = vor.u32 1.1754944e-38, %v1231_v5  ;;  %v1949_v38 = vpop.eup %1948  ;;  %v1398_v54 = vld [vmem:[%s3409_s6 + $0x8] sm:$0xff]  ;;  %v1789_v0 = vld [vmem:[%s3407_s4 + $0xf8] sm:$0xff] }
 0x194   : > { %v1147_v32 = vpop.f32.mrf.mxu2  ;;  %1956 = vrcp.f32 %v3028_v36  ;;  %v1246_v61 = vand.u32 2147483648, %v3002_v3  ;;  %v930_v5 = vand.u32 2147483647, %v2784_v63  ;;  %vm3084_vm5 = vcmp.eq.f32.partialorder %v1244_v22, 8.507059e+37 }
 0x195   : > { %1375 = vst.msk [vmem:[#allocation3 + $0x10] sm:$0xff] %vm392_vm2, %v1343_v1  ;;  %v1029_v48 = vpop.f32.mrf.mxu3  ;;  %v1148_v51 = vadd.f32 %v1147_v32, %v1106_v35  ;;  %v1224_v41 = vadd.f32 %v3000_v57, %v1223_v45  ;;  %v3059_v60 = vpop.eup %1950  ;;  %1958 = vtanh.f32 %v1343_v1  ;;  %v3090_v49 = vadd.f32 %v2866_v46, %v2972_v33  ;;  %v1788_v45 = vld [vmem:[%s3407_s4 + $0xf0] sm:$0xff] }
 0x196   : > { %v1030_v37 = vadd.f32 %v1029_v48, %v988_v6  ;;  %v1236_v14 = vmul.f32 %v3059_v60, %v3002_v3  ;;  %vm1241_vm6 = vweird.f32 %v3059_v60  ;;  %v1247_v33 = vor.u32 1.1754944e-38, %v1246_v61  ;;  %v1383_v3 = vld [vmem:[%s3408_s5 + $0x10] sm:$0xff] }
 0x197   : > { %v1170_v21 = vadd.f32 %v1787_v62, %v1148_v51  ;;  %v1228_v10 = vsel %vm1227_vm3, %v3000_v57, %v1224_v41  ;;  %vm3118_vm8 = vcmp.eq.f32.partialorder %v930_v5, 8.507059e+37  ;;  %vm1242_vm9 = vmor %vm1240_vm4, %vm1241_vm6  ;;  %v1259_v59 = vand.u32 2147483647, %v3028_v36 }
 0x198   : > { %v1953_v34 = vpop.eup %1952  ;;  %v1054_v6 = vadd.f32 %v1756_v52, %v1030_v37  ;;  %v1233_v16 = vsel %vm3036_vm0, %v1232_v44, %v1228_v10  ;;  %v1237_v30 = vsub.f32 1.0, %v1236_v14  ;;  %v680_v37 = vmul.f32 %v2735_v29, %v679_v39 }
 0x199   : > { %v1955_v13 = vpop.eup %1954  ;;  %v1336_v58 = vmul.f32 %v1953_v34, %v2611_v12  ;;  %v1795_v57 = vmul.f32 -1.442695, %v1170_v21  ;;  %v1358_v20 = vmul.f32 %v1949_v38, %v1233_v16  ;;  %v1757_v38 = vld [vmem:[%s3407_s4 + $0xa8] sm:$0xff]  ;;  %v1261_v39 = vand.u32 2147483648, %v3028_v36  ;;  %v994_v16 = vpop.f32.mrf.mxu1 }
 0x19a   : > { %v3079_v40 = vadd.f32 1.0, %v1955_v13  ;;  %1960 = vtanh.f32 %v1054_v6  ;;  %v1238_v24 = vmul.f32 %v3059_v60, %v1237_v30  ;;  %v3095_v1 = vpop.eup %1956  ;;  %vm942_vm11 = vweird.f32 %v2920_v7 }
 0x19b   : > { %v1344_v17 = vadd.f32 %v1336_v58, %v2885_v19  ;;  %1962 = vpow2.f32 %v1795_v57  ;;  %1366 = vst.msk [vmem:[#allocation2 + $0x8] sm:$0xff] %vm392_vm2, %v1358_v20  ;;  %v1390_v12 = vmul.f32 %v1382_v26, %v1358_v20  ;;  %v1109_v11 = vpop.f32.mrf.mxu0  ;;  %v3102_v19 = vor.u32 1.1754944e-38, %v673_v50  ;;  %v1959_v63 = vpop.eup %1958  ;;  %v1399_v58 = vld [vmem:[%s3409_s6 + $0x10] sm:$0xff] }
 0x19c   : > { %1964 = vrcp.f32 %v3079_v40  ;;  %v1150_v35 = vpop.f32.mrf.mxu2  ;;  %v1251_v62 = vmul.f32 %v3095_v1, %v3028_v36  ;;  %v1239_v41 = vadd.f32 %v3059_v60, %v1238_v24  ;;  %v929_v50 = vsel %vm3108_vm7, %v2866_v46, %v3090_v49 }
 0x19d   : > { %1376 = vst.msk [vmem:[#allocation3 + $0x18] sm:$0xff] %vm392_vm2, %v1344_v17  ;;  %v1406_v55 = vadd.f32 %v1398_v54, %v1390_v12  ;;  %v1032_v44 = vpop.f32.mrf.mxu3  ;;  %v1151_v48 = vadd.f32 %v1150_v35, %v1109_v11  ;;  %1966 = vtanh.f32 %v1344_v17  ;;  %vm1256_vm10 = vweird.f32 %v3095_v1  ;;  %v384_v11 = vld [vmem:[#allocation3 + $0x30] sm:$0xff] }
 0x19e   : > { %v1033_v51 = vadd.f32 %v1032_v44, %v991_v2  ;;  %v1252_v22 = vsub.f32 1.0, %v1251_v62  ;;  %v1243_v46 = vsel %vm1242_vm9, %v3059_v60, %v1239_v41  ;;  %vm1255_vm12 = vweird.f32 %v3028_v36  ;;  %v1758_v35 = vld [vmem:[%s3407_s4 + $0xb0] sm:$0xff] }
 0x19f   : > { %1799 = vmatmul.msk.f32.gmra.mxu1 %vm392_vm2, %v1406_v55  ;;  %v1171_v14 = vadd.f32 %v1788_v45, %v1151_v48  ;;  %v1248_v6 = vsel %vm3084_vm5, %v1247_v33, %v1243_v46  ;;  %vm941_vm13 = vweird.f32 %v2842_v47  ;;  %v934_v54 = vsel %vm3118_vm8, %v2877_v53, %v929_v50  ;;  %vm1257_vm14 = vmor %vm1255_vm12, %vm1256_vm10  ;;  %v1384_v55 = vld [vmem:[%s3408_s5 + $0x18] sm:$0xff] }
 0x1a0   : > { %v1961_v21 = vpop.eup %1960  ;;  %v1055_v10 = vadd.f32 %v1757_v38, %v1033_v51  ;;  %v1253_v26 = vmul.f32 %v3095_v1, %v1252_v22  ;;  %v1359_v13 = vmul.f32 %v1959_v63, %v1248_v6  ;;  %v1262_v49 = vor.u32 1.1754944e-38, %v1261_v39  ;;  %v1759_v46 = vld [vmem:[%s3407_s4 + $0xb8] sm:$0xff]  ;;  %vm3219_vm5 = vmor %vm941_vm13, %vm942_vm11 }
 0x1a1   : > { %v1963_v2 = vpop.eup %1962  ;;  %v1337_v61 = vmul.f32 %v1961_v21, %v2733_v27  ;;  %v1796_v34 = vmul.f32 -1.442695, %v1171_v14  ;;  %vm1260_vm15 = vcmp.eq.f32.partialorder %v1259_v59, 8.507059e+37  ;;  %vm672_vm0 = vcmp.eq.f32.partialorder %v671_v28, 8.507059e+37  ;;  %v997_v14 = vpop.f32.mrf.mxu1 }
 0x1a2   : > { %v3146_v5 = vpop.eup %1964  ;;  %v3149_v60 = vadd.f32 1.0, %v1963_v2  ;;  %1968 = vtanh.f32 %v1055_v10  ;;  %v1254_v20 = vadd.f32 %v3095_v1, %v1253_v26  ;;  %1367 = vst.msk [vmem:[#allocation2 + $0x10] sm:$0xff] %vm392_vm2, %v1359_v13  ;;  %v1391_v36 = vmul.f32 %v1383_v3, %v1359_v13 }
 0x1a3   : > { %v1266_v27 = vmul.f32 %v3146_v5, %v3079_v40  ;;  %v1345_v30 = vadd.f32 %v1337_v61, %v2982_v43  ;;  %1970 = vpow2.f32 %v1796_v34  ;;  %v1112_v57 = vpop.f32.mrf.mxu0  ;;  %v1967_v17 = vpop.eup %1966  ;;  %v675_v44 = vsel %vm672_vm0, %v3102_v19, %v670_v8  ;;  %v1400_v19 = vld [vmem:[%s3409_s6 + $0x18] sm:$0xff] }
 0x1a4   : > { %1972 = vrcp.f32 %v3149_v60  ;;  %v1153_v43 = vpop.f32.mrf.mxu2  ;;  %v1258_v45 = vsel %vm1257_vm14, %v3095_v1, %v1254_v20  ;;  %v1407_v33 = vadd.f32 %v1399_v58, %v1391_v36  ;;  %v3187_v48 = vadd.f32 %v2735_v29, %v680_v37 }
 0x1a5   : > { %v1267_v12 = vsub.f32 1.0, %v1266_v27  ;;  %1377 = vst.msk [vmem:[#allocation3 + $0x20] sm:$0xff] %vm392_vm2, %v1345_v30  ;;  %v1035_v24 = vpop.f32.mrf.mxu3  ;;  %v1154_v53 = vadd.f32 %v1153_v43, %v1112_v57  ;;  %v1263_v62 = vsel %vm1260_vm15, %v1262_v49, %v1258_v45  ;;  %v1331_v52 = vmul.f32 %v934_v54, %v384_v11  ;;  %v1385_v49 = vld [vmem:[%s3408_s5 + $0x20] sm:$0xff] }
 0x1a6   : > { %v1036_v32 = vadd.f32 %v1035_v24, %v994_v16  ;;  %v1360_v1 = vmul.f32 %v1967_v17, %v1263_v62  ;;  %vm683_vm3 = vweird.f32 %v2735_v29  ;;  %1974 = vtanh.f32 %v1345_v30 }
 0x1a7   : > { %v1172_v38 = vadd.f32 %v1789_v0, %v1154_v53  ;;  %1800 = vmatmul.msk.f32.gmra.mxu1 %vm392_vm2, %v1407_v33  ;;  %v1268_v63 = vmul.f32 %v3146_v5, %v1267_v12  ;;  %vm682_vm1 = vweird.f32 %v2651_v42  ;;  %v686_v50 = vand.u32 2147483647, %v2651_v42  ;;  %v1401_v33 = vld [vmem:[%s3409_s6 + $0x20] sm:$0xff] }
 0x1a8   : > { %v1969_v56 = vpop.eup %1968  ;;  %v1056_v28 = vadd.f32 %v1758_v35, %v1036_v32  ;;  %1368 = vst.msk [vmem:[#allocation2 + $0x18] sm:$0xff] %vm392_vm2, %v1360_v1  ;;  %v1392_v8 = vmul.f32 %v1384_v55, %v1360_v1  ;;  %v688_v21 = vand.u32 2147483648, %v2651_v42  ;;  %vm1271_vm4 = vweird.f32 %v3146_v5  ;;  %vm3261_vm13 = vmor %vm682_vm1, %vm683_vm3  ;;  %v385_v55 = vld [vmem:[#allocation3 + $0x38] sm:$0xff] }
 0x1a9   : > { %v1971_v4 = vpop.eup %1970  ;;  %v1338_v31 = vmul.f32 %v1969_v56, %v2831_v9  ;;  %v1797_v23 = vmul.f32 -1.442695, %v1172_v38  ;;  %v940_v9 = vadd.f32 %v2920_v7, %v3023_v25  ;;  %v1269_v59 = vadd.f32 %v3146_v5, %v1268_v63 }
 0x1aa   : > { %v3197_v51 = vpop.eup %1972  ;;  %v3199_v41 = vadd.f32 1.0, %v1971_v4  ;;  %1976 = vtanh.f32 %v1056_v28  ;;  %v1408_v10 = vadd.f32 %v1400_v19, %v1392_v8  ;;  %v945_v39 = vand.u32 2147483647, %v2842_v47 }
 0x1ab   : > { %v1281_v37 = vmul.f32 %v3197_v51, %v3149_v60  ;;  %v1346_v22 = vadd.f32 %v1338_v31, %v3040_v18  ;;  %1978 = vpow2.f32 %v1797_v23  ;;  %vm1270_vm6 = vweird.f32 %v3079_v40 }
 0x1ac   : > { %1980 = vrcp.f32 %v3199_v41  ;;  %v1274_v61 = vand.u32 2147483647, %v3079_v40  ;;  %v944_v34 = vsel %vm3219_vm5, %v2920_v7, %v940_v9  ;;  %vm3230_vm7 = vmor %vm1270_vm6, %vm1271_vm4  ;;  %v1276_v16 = vand.u32 2147483648, %v3079_v40  ;;  %v1975_v26 = vpop.eup %1974 }
 0x1ad   : > { %v1282_v18 = vsub.f32 1.0, %v1281_v37  ;;  %1378 = vst.msk [vmem:[#allocation3 + $0x28] sm:$0xff] %vm392_vm2, %v1346_v22  ;;  %v1038_v2 = vpop.f32.mrf.mxu3  ;;  %1982 = vtanh.f32 %v1346_v22  ;;  %v1273_v47 = vsel %vm3230_vm7, %v3146_v5, %v1269_v59  ;;  %vm1286_vm8 = vweird.f32 %v3197_v51 }
 0x1ae   : > { %v1039_v6 = vadd.f32 %v1038_v2, %v997_v14  ;;  %v1289_v27 = vand.u32 2147483647, %v3149_v60  ;;  %v1277_v58 = vor.u32 1.1754944e-38, %v1276_v16  ;;  %vm1285_vm9 = vweird.f32 %v3149_v60 }
 0x1af   : > { %v1283_v13 = vmul.f32 %v3197_v51, %v1282_v18  ;;  %1801 = vmatmul.msk.f32.gmra.mxu1 %vm392_vm2, %v1408_v10  ;;  %v1291_v40 = vand.u32 2147483648, %v3149_v60  ;;  %vm1275_vm10 = vcmp.eq.f32.partialorder %v1274_v61, 8.507059e+37  ;;  %vm1287_vm12 = vmor %vm1285_vm9, %vm1286_vm8  ;;  %v685_v45 = vsel %vm3261_vm13, %v2735_v29, %v3187_v48  ;;  %v1386_v48 = vld [vmem:[%s3408_s5 + $0x28] sm:$0xff] }
 0x1b0   : > { %v1977_v30 = vpop.eup %1976  ;;  %v1057_v7 = vadd.f32 %v1759_v46, %v1039_v6  ;;  %vm3245_vm11 = vcmp.eq.f32.partialorder %v1289_v27, 8.507059e+37  ;;  %v1278_v0 = vsel %vm1275_vm10, %v1277_v58, %v1273_v47  ;;  %vm946_vm14 = vcmp.eq.f32.partialorder %v945_v39, 8.507059e+37  ;;  %v1388_v27 = vld [vmem:[%s3408_s5 + $0x38] sm:$0xff] }
 0x1b1   : > { %v1979_v57 = vpop.eup %1978  ;;  %v1339_v20 = vmul.f32 %v1977_v30, %v675_v44  ;;  %v1284_v5 = vadd.f32 %v3197_v51, %v1283_v13  ;;  %v1292_v60 = vor.u32 1.1754944e-38, %v1291_v40  ;;  %v1361_v24 = vmul.f32 %v1975_v26, %v1278_v0  ;;  %v1863_v40 = vld [vmem:[%s3411_s8] ss:$0 sm:$0xff] }
 0x1b2   : > { %v1981_v54 = vpop.eup %1980  ;;  %v3249_v43 = vadd.f32 1.0, %v1979_v57  ;;  %1984 = vtanh.f32 %v1057_v7  ;;  %v949_v44 = vsel %vm946_vm14, %v2965_v15, %v944_v34  ;;  %vm687_vm15 = vcmp.eq.f32.partialorder %v686_v50, 8.507059e+37  ;;  %v1403_v34 = vld [vmem:[%s3409_s6 + $0x30] sm:$0xff]  ;;  %v1404_v7 = vld [vmem:[%s3409_s6 + $0x38] sm:$0xff] }
 0x1b3   : > { %v1296_v17 = vmul.f32 %v1981_v54, %v3199_v41  ;;  %v1347_v12 = vadd.f32 %v1339_v20, %v1331_v52  ;;  %v1288_v35 = vsel %vm1287_vm12, %v3197_v51, %v1284_v5  ;;  %v1983_v53 = vpop.eup %1982  ;;  %v1393_v38 = vmul.f32 %v1385_v49, %v1361_v24  ;;  %1369 = vst.msk [vmem:[#allocation2 + $0x20] sm:$0xff] %vm392_vm2, %v1361_v24  ;;  %v1402_v51 = vld [vmem:[%s3409_s6 + $0x28] sm:$0xff] }
 0x1b4   : > { %1986 = vrcp.f32 %v3249_v43  ;;  %v1293_v32 = vsel %vm3245_vm11, %v1292_v60, %v1288_v35  ;;  %v689_v29 = vor.u32 1.1754944e-38, %v688_v21  ;;  %v1306_v56 = vand.u32 2147483648, %v3199_v41 }
 0x1b5   : > { %v1297_v62 = vsub.f32 1.0, %v1296_v17  ;;  %1379 = vst.msk [vmem:[#allocation3 + $0x30] sm:$0xff] %vm392_vm2, %v1347_v12  ;;  %v1362_v1 = vmul.f32 %v1983_v53, %v1293_v32  ;;  %1988 = vtanh.f32 %v1347_v12  ;;  %v1409_v28 = vadd.f32 %v1401_v33, %v1393_v38 }
 0x1b6   : > { %vm1301_vm0 = vweird.f32 %v1981_v54  ;;  %v1304_v15 = vand.u32 2147483647, %v3199_v41  ;;  %v690_v4 = vsel %vm687_vm15, %v689_v29, %v685_v45  ;;  %v1332_v42 = vmul.f32 %v949_v44, %v385_v55 }
 0x1b7   : > { %1370 = vst.msk [vmem:[#allocation2 + $0x28] sm:$0xff] %vm392_vm2, %v1362_v1  ;;  %v1298_v52 = vmul.f32 %v1981_v54, %v1297_v62  ;;  %1802 = vmatmul.msk.f32.gmra.mxu1 %vm392_vm2, %v1409_v28  ;;  %v1394_v23 = vmul.f32 %v1386_v48, %v1362_v1  ;;  %vm1300_vm3 = vweird.f32 %v3199_v41  ;;  %v1307_v50 = vor.u32 1.1754944e-38, %v1306_v56  ;;  %v1387_v41 = vld [vmem:[%s3408_s5 + $0x30] sm:$0xff] }
 0x1b8   : > { %v1985_v63 = vpop.eup %1984  ;;  %vm1302_vm1 = vmor %vm1300_vm3, %vm1301_vm0  ;;  %vm1305_vm4 = vcmp.eq.f32.partialorder %v1304_v15, 8.507059e+37  ;;  %v1321_v25 = vand.u32 2147483648, %v3249_v43  ;;  %v1319_v39 = vand.u32 2147483647, %v3249_v43  ;;  %vm1315_vm6 = vweird.f32 %v3249_v43 }
 0x1b9   : > { %v1340_v31 = vmul.f32 %v1985_v63, %v690_v4  ;;  %v1299_v8 = vadd.f32 %v1981_v54, %v1298_v52  ;;  %v1410_v46 = vadd.f32 %v1402_v51, %v1394_v23 }
 0x1ba   : > { %v1987_v19 = vpop.eup %1986  ;;  %v1322_v6 = vor.u32 1.1754944e-38, %v1321_v25  ;;  %vm1320_vm8 = vcmp.eq.f32.partialorder %v1319_v39, 8.507059e+37 }
 0x1bb   : > { %v1311_v9 = vmul.f32 %v1987_v19, %v3249_v43  ;;  %v1348_v37 = vadd.f32 %v1340_v31, %v1332_v42  ;;  %v1303_v22 = vsel %vm1302_vm1, %v1981_v54, %v1299_v8  ;;  %v1989_v14 = vpop.eup %1988  ;;  %vm1316_vm5 = vweird.f32 %v1987_v19 }
 0x1bc   : > { %v1308_v21 = vsel %vm1305_vm4, %v1307_v50, %v1303_v22  ;;  %vm1317_vm7 = vmor %vm1315_vm6, %vm1316_vm5 }
 0x1bd   : > { %v1312_v10 = vsub.f32 1.0, %v1311_v9  ;;  %1380 = vst.msk [vmem:[#allocation3 + $0x38] sm:$0xff] %vm392_vm2, %v1348_v37  ;;  %v1363_v59 = vmul.f32 %v1989_v14, %v1308_v21  ;;  %1990 = vtanh.f32 %v1348_v37 }
 0x1bf   : > { %1371 = vst.msk [vmem:[#allocation2 + $0x30] sm:$0xff] %vm392_vm2, %v1363_v59  ;;  %v1313_v18 = vmul.f32 %v1987_v19, %v1312_v10  ;;  %1803 = vmatmul.msk.f32.gmra.mxu1 %vm392_vm2, %v1410_v46  ;;  %v1395_v2 = vmul.f32 %v1387_v41, %v1363_v59 }
 0x1c1   : > { %v1314_v61 = vadd.f32 %v1987_v19, %v1313_v18  ;;  %v1411_v47 = vadd.f32 %v1403_v34, %v1395_v2 }
 0x1c3   : > { %v1318_v3 = vsel %vm1317_vm7, %v1987_v19, %v1314_v61  ;;  %v1991_v16 = vpop.eup %1990 }
 0x1c4   : > { %v1323_v26 = vsel %vm1320_vm8, %v1322_v6, %v1318_v3 }
 0x1c5   : > { %v1364_v13 = vmul.f32 %v1991_v16, %v1323_v26 }
 0x1c7   : > { %1372 = vst.msk [vmem:[#allocation2 + $0x38] sm:$0xff] %vm392_vm2, %v1364_v13  ;;  %1804 = vmatmul.msk.f32.gmra.mxu1 %vm392_vm2, %v1411_v47  ;;  %v1396_v30 = vmul.f32 %v1388_v27, %v1364_v13 }
 0x1c9   : > { %v1412_v58 = vadd.f32 %v1404_v7, %v1396_v30 }
 0x1cf   : > { %1805 = vmatmul.msk.f32.gmra.mxu1 %vm392_vm2, %v1412_v58 }
 0x210   : > { %v1462_v57 = vpop.f32.mrf.mxu1 }
 0x211   : > { %v3317_v20 = vadd.f32 %v1863_v40, %v1462_v57 }
 0x213   : > { %1486 = vmax.xlane.f32.xlu0 %v3317_v20 }
 0x21c   : > { %v1465_v5 = vpop.f32.mrf.mxu1 }
 0x21d   : > { %v3320_v36 = vadd.f32 %v1863_v40, %v1465_v5 }
 0x21f   : > { %1488 = vmax.xlane.f32.xlu0 %v3320_v36 }
 0x224   : > { %v1468_v54 = vpop.f32.mrf.mxu1 }
 0x225   : > { %v3323_v43 = vadd.f32 %v1863_v40, %v1468_v54 }
 0x227   : > { %1490 = vmax.xlane.f32.xlu1 %v3323_v43 }
 0x22c   : > { %v1471_v0 = vpop.f32.mrf.mxu1 }
 0x22d   : > { %v3326_v49 = vadd.f32 %v1863_v40, %v1471_v0 }
 0x22f   : > { %1492 = vmax.xlane.f32.xlu1 %v3326_v49 }
 0x234   : > { %v1474_v60 = vpop.f32.mrf.mxu1 }
 0x235   : > { %v3329_v17 = vadd.f32 %v1863_v40, %v1474_v60 }
 0x237   : > { %1494 = vmax.xlane.f32.xlu2 %v3329_v17 }
 0x23c   : > { %v1477_v12 = vpop.f32.mrf.mxu1 }
 0x23d   : > { %v3332_v11 = vadd.f32 %v1863_v40, %v1477_v12 }
 0x23f   : > { %1496 = vmax.xlane.f32.xlu2 %v3332_v11 }
 0x244   : > { %v1480_v24 = vpop.f32.mrf.mxu1 }
 0x245   : > { %v3335_v35 = vadd.f32 %v1863_v40, %v1480_v24 }
 0x247   : > { %1498 = vmax.xlane.f32.xlu0 %v3335_v35 }
 0x24c   : > { %v1483_v53 = vpop.f32.mrf.mxu1 }
 0x24d   : > { %v3338_v45 = vadd.f32 %v1863_v40, %v1483_v53 }
 0x24f   : > { %1500 = vmax.xlane.f32.xlu1 %v3338_v45 }
 0x286   : > { %v1487_v33 = vpop.xlane.xlu0 %1486 }
 0x287   : > { %v1502_v32 = vsub.f32 %v3317_v20, %v1487_v33 }
 0x289   : > { %v1510_v62 = vmul.f32 1.442695, %v1502_v32 }
 0x28b   : > { %1992 = vpow2.f32 %v1510_v62 }
 0x291   : > { %v1993_v55 = vpop.eup %1992 }
 0x292   : > { %v1489_v44 = vpop.xlane.xlu0 %1488  ;;  %1526 = vadd.xlane.f32.xlu2 %v1993_v55 }
 0x293   : > { %v1503_v38 = vsub.f32 %v3320_v36, %v1489_v44 }
 0x295   : > { %v1512_v1 = vmul.f32 1.442695, %v1503_v38 }
 0x297   : > { %1994 = vpow2.f32 %v1512_v1 }
 0x29a   : > { %v1491_v29 = vpop.xlane.xlu1 %1490 }
 0x29b   : > { %v1504_v48 = vsub.f32 %v3323_v43, %v1491_v29 }
 0x29d   : > { %v1995_v56 = vpop.eup %1994  ;;  %v1514_v28 = vmul.f32 1.442695, %v1504_v48 }
 0x29e   : > { %1528 = vadd.xlane.f32.xlu0 %v1995_v56 }
 0x29f   : > { %1996 = vpow2.f32 %v1514_v28 }
 0x2a2   : > { %v1493_v52 = vpop.xlane.xlu1 %1492 }
 0x2a3   : > { %v1505_v15 = vsub.f32 %v3326_v49, %v1493_v52 }
 0x2a5   : > { %v1997_v63 = vpop.eup %1996  ;;  %v1516_v4 = vmul.f32 1.442695, %v1505_v15 }
 0x2a6   : > { %1530 = vadd.xlane.f32.xlu1 %v1997_v63 }
 0x2a7   : > { %1998 = vpow2.f32 %v1516_v4 }
 0x2aa   : > { %v1495_v42 = vpop.xlane.xlu2 %1494 }
 0x2ab   : > { %v1506_v31 = vsub.f32 %v3329_v17, %v1495_v42 }
 0x2ad   : > { %v1999_v23 = vpop.eup %1998  ;;  %v1518_v8 = vmul.f32 1.442695, %v1506_v31 }
 0x2ae   : > { %1532 = vadd.xlane.f32.xlu2 %v1999_v23 }
 0x2af   : > { %2000 = vpow2.f32 %v1518_v8 }
 0x2b2   : > { %v1497_v19 = vpop.xlane.xlu2 %1496 }
 0x2b3   : > { %v1507_v51 = vsub.f32 %v3332_v11, %v1497_v19 }
 0x2b5   : > { %v2001_v50 = vpop.eup %2000  ;;  %v1520_v9 = vmul.f32 1.442695, %v1507_v51 }
 0x2b6   : > { %1534 = vadd.xlane.f32.xlu0 %v2001_v50 }
 0x2b7   : > { %2002 = vpow2.f32 %v1520_v9 }
 0x2ba   : > { %v1499_v37 = vpop.xlane.xlu0 %1498 }
 0x2bb   : > { %v1508_v22 = vsub.f32 %v3335_v35, %v1499_v37 }
 0x2bd   : > { %v2003_v14 = vpop.eup %2002  ;;  %v1522_v21 = vmul.f32 1.442695, %v1508_v22 }
 0x2be   : > { %1536 = vadd.xlane.f32.xlu1 %v2003_v14 }
 0x2bf   : > { %2004 = vpow2.f32 %v1522_v21 }
 0x2c2   : > { %v3348_v10 = vpop.xlane.xlu1 %1500 }
 0x2c3   : > { %v1509_v46 = vsub.f32 %v3338_v45, %v3348_v10 }
 0x2c5   : > { %v2005_v59 = vpop.eup %2004  ;;  %v1524_v41 = vmul.f32 1.442695, %v1509_v46 }
 0x2c6   : > { %1538 = vadd.xlane.f32.xlu2 %v2005_v59 }
 0x2c7   : > { %2006 = vpow2.f32 %v1524_v41 }
 0x2cd   : > { %v2007_v25 = vpop.eup %2006 }
 0x2ce   : > { %1540 = vadd.xlane.f32.xlu0 %v2007_v25 }
 0x305   : > { %v1527_v18 = vpop.xlane.xlu2 %1526 }
 0x306   : > { %2008 = vlog2.f32 %v1527_v18 }
 0x30c   : > { %v2009_v39 = vpop.eup %2008 }
 0x30d   : > { %v1543_v2 = vmul.f32 0.6931472, %v2009_v39 }
 0x30f   : > { %v1558_v61 = vadd.f32 %v1543_v2, %v1487_v33 }
 0x311   : > { %v1566_v34 = vsub.f32 %v3317_v20, %v1558_v61  ;;  %v1529_v6 = vpop.xlane.xlu0 %1528 }
 0x312   : > { %2010 = vlog2.f32 %v1529_v6 }
 0x313   : > { %1574 = vst [vmem:[%s2199_s28] sm:$0xff] %v1566_v34 }
 0x318   : > { %v2011_v3 = vpop.eup %2010 }
 0x319   : > { %v1545_v16 = vmul.f32 0.6931472, %v2011_v3  ;;  %v1531_v26 = vpop.xlane.xlu1 %1530 }
 0x31a   : > { %2012 = vlog2.f32 %v1531_v26 }
 0x31b   : > { %v1559_v47 = vadd.f32 %v1545_v16, %v1489_v44 }
 0x31d   : > { %v1567_v13 = vsub.f32 %v3320_v36, %v1559_v47 }
 0x31f   : > { %1575 = vst [vmem:[%s2199_s28 + $0x8] sm:$0xff] %v1567_v13 }
 0x320   : > { %v2013_v27 = vpop.eup %2012 }
 0x321   : > { %v1547_v30 = vmul.f32 0.6931472, %v2013_v27  ;;  %v1533_v7 = vpop.xlane.xlu2 %1532 }
 0x322   : > { %2014 = vlog2.f32 %v1533_v7 }
 0x323   : > { %v1560_v58 = vadd.f32 %v1547_v30, %v1491_v29 }
 0x325   : > { %v1568_v40 = vsub.f32 %v3323_v43, %v1560_v58 }
 0x327   : > { %1576 = vst [vmem:[%s2199_s28 + $0x10] sm:$0xff] %v1568_v40 }
 0x328   : > { %v2015_v57 = vpop.eup %2014 }
 0x329   : > { %v1549_v20 = vmul.f32 0.6931472, %v2015_v57  ;;  %v1535_v5 = vpop.xlane.xlu0 %1534 }
 0x32a   : > { %2016 = vlog2.f32 %v1535_v5 }
 0x32b   : > { %v1561_v54 = vadd.f32 %v1549_v20, %v1493_v52 }
 0x32d   : > { %v1569_v0 = vsub.f32 %v3326_v49, %v1561_v54 }
 0x32f   : > { %1577 = vst [vmem:[%s2199_s28 + $0x18] sm:$0xff] %v1569_v0 }
 0x330   : > { %v2017_v36 = vpop.eup %2016 }
 0x331   : > { %v1551_v60 = vmul.f32 0.6931472, %v2017_v36  ;;  %v1537_v12 = vpop.xlane.xlu1 %1536 }
 0x332   : > { %2018 = vlog2.f32 %v1537_v12 }
 0x333   : > { %v1562_v24 = vadd.f32 %v1551_v60, %v1495_v42 }
 0x335   : > { %v1570_v53 = vsub.f32 %v3329_v17, %v1562_v24 }
 0x337   : > { %1578 = vst [vmem:[%s2199_s28 + $0x20] sm:$0xff] %v1570_v53 }
 0x338   : > { %v2019_v43 = vpop.eup %2018 }
 0x339   : > { %v1553_v33 = vmul.f32 0.6931472, %v2019_v43  ;;  %v1539_v32 = vpop.xlane.xlu2 %1538 }
 0x33a   : > { %2020 = vlog2.f32 %v1539_v32 }
 0x33b   : > { %v1563_v62 = vadd.f32 %v1553_v33, %v1497_v19 }
 0x33d   : > { %v1571_v55 = vsub.f32 %v3332_v11, %v1563_v62 }
 0x33f   : > { %1579 = vst [vmem:[%s2199_s28 + $0x28] sm:$0xff] %v1571_v55 }
 0x340   : > { %v2021_v49 = vpop.eup %2020 }
 0x341   : > { %v1555_v44 = vmul.f32 0.6931472, %v2021_v49  ;;  %v1541_v38 = vpop.xlane.xlu0 %1540 }
 0x342   : > { %2022 = vlog2.f32 %v1541_v38 }
 0x343   : > { %v1564_v1 = vadd.f32 %v1555_v44, %v1499_v37 }
 0x345   : > { %v1572_v17 = vsub.f32 %v3335_v35, %v1564_v1 }
 0x347   : > { %1580 = vst [vmem:[%s2199_s28 + $0x30] sm:$0xff] %v1572_v17 }
 0x348   : > { %v2023_v29 = vpop.eup %2022 }
 0x349   : > { %v1557_v48 = vmul.f32 0.6931472, %v2023_v29 }
 0x34b   : > { %v1565_v11 = vadd.f32 %v1557_v48, %v3348_v10 }
 0x34d   : > { %v1573_v56 = vsub.f32 %v3338_v45, %v1565_v11 }
 0x34f   : > { %1581 = vst [vmem:[%s2199_s28 + $0x38] sm:$0xff] %v1573_v56 }
 0x350   : > { %2051 = shalt.err (!%p2048_p4)
}
 0x351   : > { %s2089_s21 = smov 128   ;;  %s2090_s28 = smov 8  }
 0x352   : > { %1819 = dma.vmem_to_hbm [thread:$0]  (%p2179_p5), %s1596_s24, 1024, %s1598_s25, %s1583_s13, %s2089_s21, %s2089_s21, %s2090_s28  }
 0x353 PF: > { %p1825_p7 = scmp.ge.s32.totalorder %s2086_s12, 2  ;;  %s1612_s22 = sand.u32 1, %s2074_s30  }
 0x354   : > { %s1613_s14 = scalar_lea.sflag [#allocation5], %s1612_s22 }
 0x355   : > { %p1822_p8 = pnand %p1825_p7, %p2183_p6 }
 0x357   : > { %p1823_p9 = pneg %p1822_p8 }
 0x359   : > { %2069 = dma.done.wait (%p1823_p9), %s1613_s14, 1024  }
 0x35a   : > { %2071 = vsyncadd (%p1823_p9), %s1613_s14, 4294966272  ;;  %p19_p10 = scmp.ge.s32.totalorder %s2166_s15, 6   ;;  %s3481_s30 = smov %s2078_s10 }
 0x35b   : > { %s3482_s10 = smov %s2082_s11  ;;  %s3483_s11 = smov %s2177_s18 }
 0x35c   : > { %s3484_s12 = smov %s2166_s15  ;;  %21 = sbr.rel (!%p19_p10) target bundleno = 3 (0x3), region = 104 }
 0x361   :  { %1619 = vsyncpa [#allocation5], 1 }
 0x362   :  { %1621 = vsyncpa [#allocation5 + $0x1], 1 }

</bundles_post_ra>
